<compile_context>
chip_gen: v5e
topology: v5e:2x2
jax: 0.10.0
libtpu: 0.0.40
codegen_flags: <defaults>
</compile_context>

<pallas_src>
import functools

import jax
import jax.numpy as jnp
import numpy as np
from jax.experimental import pallas as pl
from jax.experimental.pallas import tpu as pltpu


def _hyper_patch_kernel(w_ref, e_ref, x_ref, o_ref, wexp_ref, *,
                        cout, cin, ph, rpt, cob):
    """One grid step: `rpt` whole patch rows of one batch element.

    w_ref   : (1, rpt*Cout*Cin, fw)  hyper-net weights for this row tile
    e_ref   : (fw, W)                constant 0/1 width-expansion matrix
    x_ref   : (1, Cin, TH, W)        NCHW activation slab, TH = rpt*ph
    o_ref   : (1, Cout, TH, W)
    wexp_ref: (rpt*Cout*Cin, W)      VMEM scratch for width-expanded weights
    """
    # Single batched MXU matmul expands every per-(row, co, ci) scalar along
    # the width; the expansion matrix is exact 0/1, so the f32 product is exact.
    wexp_ref[...] = jnp.dot(w_ref[0].astype(jnp.float32), e_ref[...],
                            preferred_element_type=jnp.float32)

    for r in range(rpt):
        rows = pl.ds(r * ph, ph)
        base = r * cout * cin
        for co0 in range(0, cout, cob):
            g = min(cob, cout - co0)
            accs = [None] * g
            for ci in range(cin):
                # One x slice load per (ci, co-block): reused across g outputs.
                xs = x_ref[0, ci, rows, :].astype(jnp.float32)       # (ph, W)
                for j in range(g):
                    k = base + (co0 + j) * cin + ci
                    term = xs * wexp_ref[k:k + 1, :]                 # (ph, W)
                    accs[j] = term if accs[j] is None else accs[j] + term
            for j in range(g):
                o_ref[0, co0 + j, rows, :] = accs[j].astype(o_ref.dtype)


def _pick_rows_per_tile(b, fh, ph, height, width, cin, cout, itemsize, sublane,
                        target_bytes=6 << 20, min_steps=4):
    """Patch rows per grid step: sublane aligned, ~6 MiB x+out per tile,
    and >=4 total grid steps (>=2 per TensorCore on megacore) when possible."""
    cands = [r for r in range(1, fh + 1)
             if fh % r == 0
             and ((r * ph) % sublane == 0 or r * ph == height)
             and ((r * cout * cin) % 8 == 0 or r == fh)]
    if not cands:
        return fh

    def steps(r):
        return b * (fh // r)

    def tile_bytes(r):
        return (cin + cout) * (r * ph) * width * itemsize

    fits = [r for r in cands if tile_bytes(r) <= target_bytes]
    if not fits:
        fits = [min(cands, key=tile_bytes)]
    good = [r for r in fits if steps(r) >= min_steps]
    # Largest tile that keeps enough steps; otherwise maximize step count.
    return max(good) if good else min(fits)


def hyper_patch_no_padding(x, weight, out_channels, groups=1):
    """Pallas implementation of HyperPatchNoPadding.forward (k=1, groups=1)."""
    assert groups == 1, "only groups=1 supported"
    b, cin, height, width = x.shape
    fh, fw = weight.shape[-2:]
    assert height % fh == 0 and width % fw == 0, "spatial dims must tile the feature grid"
    ph, pw = height // fh, width // fw
    assert weight.shape[1] == out_channels * cin, "weight channel dim mismatch (k=1 assumed)"

    itemsize = jnp.dtype(x.dtype).itemsize
    sublane = {4: 8, 2: 16, 1: 32}.get(itemsize, 8)
    rpt = _pick_rows_per_tile(b, fh, ph, height, width, cin, out_channels,
                              itemsize, sublane)
    row_tiles = fh // rpt
    th = rpt * ph
    cob = min(4, out_channels)

    # Only the (small) hyper-net weight is relayouted:
    # (b, Cout*Cin, fh, fw) -> (b, fh*Cout*Cin, fw), row = f*(Cout*Cin) + co*Cin + ci
    w_r = jnp.transpose(weight, (0, 2, 1, 3)).reshape(b, fh * out_channels * cin, fw)

    # Constant 0/1 expansion matrix E[j, x] = 1 iff lane x lies in patch column j.
    expand = (jnp.arange(width, dtype=jnp.int32)[None, :] // pw
              == jnp.arange(fw, dtype=jnp.int32)[:, None]).astype(jnp.float32)

    kernel = functools.partial(_hyper_patch_kernel, cout=out_channels, cin=cin,
                               ph=ph, rpt=rpt, cob=cob)

    # VMEM budget: double-buffered blocks + resident constant/scratch, with headroom.
    blk_bytes = ((cin + out_channels) * th * width * itemsize
                 + rpt * out_channels * cin * fw * itemsize)
    resident = fw * width * 4 + rpt * out_channels * cin * width * 4
    vmem_needed = 2 * blk_bytes + resident
    vmem_limit = int(min(max(2 * vmem_needed, 32 << 20), 64 << 20))

    flops = 2 * b * out_channels * cin * height * width
    bytes_accessed = itemsize * (b * cin * height * width
                                 + b * out_channels * height * width
                                 + b * out_channels * cin * fh * fw)

    out = pl.pallas_call(
        kernel,
        out_shape=jax.ShapeDtypeStruct((b, out_channels, height, width), x.dtype),
        grid_spec=pltpu.PrefetchScalarGridSpec(
            num_scalar_prefetch=0,
            grid=(b, row_tiles),
            in_specs=[
                pl.BlockSpec((1, rpt * out_channels * cin, fw),
                             lambda bb, t: (bb, t, 0)),
                pl.BlockSpec((fw, width), lambda bb, t: (0, 0)),
                pl.BlockSpec((1, cin, th, width), lambda bb, t: (bb, 0, t, 0)),
            ],
            out_specs=pl.BlockSpec((1, out_channels, th, width),
                                   lambda bb, t: (bb, 0, t, 0)),
            scratch_shapes=[pltpu.VMEM((rpt * out_channels * cin, width),
                                       jnp.float32)],
        ),
        compiler_params=pltpu.CompilerParams(
            dimension_semantics=("parallel", "parallel"),
            vmem_limit_bytes=vmem_limit),
        cost_estimate=pl.CostEstimate(flops=flops, transcendentals=0,
                                      bytes_accessed=bytes_accessed),
    )(w_r, expand, x)
    return out


def _reference(x, weight, out_channels):
    """Pure-JAX reference matching the PyTorch forward (k=1, groups=1)."""
    b, c, h, w = x.shape
    fh, fw = weight.shape[-2:]
    ph, pw = h // fh, w // fw
    w_r = jnp.transpose(weight, (0, 2, 3, 1)).reshape(b, fh, fw, out_channels, c)
    x_r = jnp.transpose(x.reshape(b, c, fh, ph, fw, pw), (0, 2, 4, 1, 3, 5))
    o = jnp.einsum('bijoc,bijcyx->bijoyx', w_r, x_r)
    o = jnp.transpose(o, (0, 3, 1, 4, 2, 5)).reshape(b, out_channels, h, w)
    return o


if __name__ == "__main__":
    key = jax.random.PRNGKey(0)
    configs = [
        # (b, cin, cout, H, W, fh, fw)
        (2, 8, 8, 16, 16, 4, 4),      # 4x4 feature grid, 4x4 pixel patches
        (1, 8, 16, 32, 32, 8, 8),     # multi-row tiles / row_tiles > 1
        (1, 4, 4, 16, 128, 4, 8),     # lane-dense width (W = 128)
    ]
    for (b, cin, cout, h, w, fh, fw) in configs:
        k1, k2, key = jax.random.split(key, 3)
        x = jax.random.normal(k1, (b, cin, h, w), dtype=jnp.float32)
        weight = 0.1 * jax.random.normal(k2, (b, cout * cin, fh, fw), dtype=jnp.float32)

        out = jax.block_until_ready(hyper_patch_no_padding(x, weight, cout))
        ref = _reference(x, weight, cout)
        np.testing.assert_allclose(np.asarray(out), np.asarray(ref),
                                   rtol=1e-4, atol=1e-4)
    print("KERNEL_OK")
</pallas_src>

<mosaic_0001>
module attributes {stable_mosaic.version = 11 : i64} {
  func.func @_hyper_patch_kernel(%arg0: i32, %arg1: i32, %arg2: memref<1x128x4xf32, #tpu.memory_space<vmem>>, %arg3: memref<4x16xf32, #tpu.memory_space<vmem>>, %arg4: memref<1x8x8x16xf32, #tpu.memory_space<vmem>>, %arg5: memref<1x8x8x16xf32, #tpu.memory_space<vmem>>, %arg6: memref<128x16xf32, #tpu.memory_space<vmem>>) attributes {dimension_semantics = [#tpu.dimension_semantics<parallel>, #tpu.dimension_semantics<parallel>], iteration_bounds = array<i64: 2, 2>, scalar_prefetch = 0 : i64, scratch_operands = 1 : i64, tpu.core_type = #tpu.core_type<tc>, window_params = [{transform_indices = @transform_0, window_bounds = array<i64: 1, 128, 4>}, {pipeline_mode = #tpu.pipeline_mode<synchronous>, transform_indices = @transform_1, window_bounds = array<i64: 4, 16>}, {transform_indices = @transform_2, window_bounds = array<i64: 1, 8, 8, 16>}, {transform_indices = @transform_3, window_bounds = array<i64: 1, 8, 8, 16>}]} {
    %c0 = arith.constant 0 : index
    %c0_0 = arith.constant 0 : index
    %c0_1 = arith.constant 0 : index
    %0 = vector.load %arg2[%c0, %c0_0, %c0_1] : memref<1x128x4xf32, #tpu.memory_space<vmem>>, vector<1x128x4xf32>
    %1 = vector.shape_cast %0 : vector<1x128x4xf32> to vector<128x4xf32>
    %c0_2 = arith.constant 0 : index
    %c0_3 = arith.constant 0 : index
    %2 = vector.load %arg3[%c0_2, %c0_3] : memref<4x16xf32, #tpu.memory_space<vmem>>, vector<4x16xf32>
    %cst = arith.constant dense<0.000000e+00> : vector<128x16xf32>
    %3 = tpu.matmul %1, %2, %cst {dimension_numbers = #tpu.dot_dimension_numbers<[1], [0], [0], [1], [0, 0, 1, 1], [], []>} : vector<128x4xf32>, vector<4x16xf32>, vector<128x16xf32> -> vector<128x16xf32>
    %c0_4 = arith.constant 0 : index
    %c0_5 = arith.constant 0 : index
    %4 = vector.load %arg6[%c0_4, %c0_5] : memref<128x16xf32, #tpu.memory_space<vmem>>, vector<128x16xf32>
    tpu.vector_store %arg6[%c0_4, %c0_5], %3 {strides = array<i32>} : memref<128x16xf32, #tpu.memory_space<vmem>>, vector<128x16xf32>,
    %c0_6 = arith.constant 0 : index
    %c0_7 = arith.constant 0 : index
    %c0_8 = arith.constant 0 : index
    %c0_9 = arith.constant 0 : index
    %5 = vector.load %arg4[%c0_6, %c0_7, %c0_8, %c0_9] : memref<1x8x8x16xf32, #tpu.memory_space<vmem>>, vector<1x1x4x16xf32>
    %6 = vector.shape_cast %5 : vector<1x1x4x16xf32> to vector<4x16xf32>
    %c0_10 = arith.constant 0 : index
    %c0_11 = arith.constant 0 : index
    %7 = vector.load %arg6[%c0_10, %c0_11] : memref<128x16xf32, #tpu.memory_space<vmem>>, vector<1x16xf32>
    %8 = vector.broadcast %7 : vector<1x16xf32> to vector<4x16xf32>
    %9 = arith.mulf %6, %8 : vector<4x16xf32>
    %c8 = arith.constant 8 : index
    %c0_12 = arith.constant 0 : index
    %10 = vector.load %arg6[%c8, %c0_12] : memref<128x16xf32, #tpu.memory_space<vmem>>, vector<1x16xf32>
    %11 = vector.broadcast %10 : vector<1x16xf32> to vector<4x16xf32>
    %12 = arith.mulf %6, %11 : vector<4x16xf32>
    %c16 = arith.constant 16 : index
    %c0_13 = arith.constant 0 : index
    %13 = vector.load %arg6[%c16, %c0_13] : memref<128x16xf32, #tpu.memory_space<vmem>>, vector<1x16xf32>
    %14 = vector.broadcast %13 : vector<1x16xf32> to vector<4x16xf32>
    %15 = arith.mulf %6, %14 : vector<4x16xf32>
    %c24 = arith.constant 24 : index
    %c0_14 = arith.constant 0 : index
    %16 = vector.load %arg6[%c24, %c0_14] : memref<128x16xf32, #tpu.memory_space<vmem>>, vector<1x16xf32>
    %17 = vector.broadcast %16 : vector<1x16xf32> to vector<4x16xf32>
    %18 = arith.mulf %6, %17 : vector<4x16xf32>
    %c0_15 = arith.constant 0 : index
    %c1 = arith.constant 1 : index
    %c0_16 = arith.constant 0 : index
    %c0_17 = arith.constant 0 : index
    %19 = vector.load %arg4[%c0_15, %c1, %c0_16, %c0_17] : memref<1x8x8x16xf32, #tpu.memory_space<vmem>>, vector<1x1x4x16xf32>
    %20 = vector.shape_cast %19 : vector<1x1x4x16xf32> to vector<4x16xf32>
    %c1_18 = arith.constant 1 : index
    %c0_19 = arith.constant 0 : index
    %21 = vector.load %arg6[%c1_18, %c0_19] : memref<128x16xf32, #tpu.memory_space<vmem>>, vector<1x16xf32>
    %22 = vector.broadcast %21 : vector<1x16xf32> to vector<4x16xf32>
    %23 = arith.mulf %20, %22 : vector<4x16xf32>
    %24 = arith.addf %9, %23 : vector<4x16xf32>
    %c9 = arith.constant 9 : index
    %c0_20 = arith.constant 0 : index
    %25 = vector.load %arg6[%c9, %c0_20] : memref<128x16xf32, #tpu.memory_space<vmem>>, vector<1x16xf32>
    %26 = vector.broadcast %25 : vector<1x16xf32> to vector<4x16xf32>
    %27 = arith.mulf %20, %26 : vector<4x16xf32>
    %28 = arith.addf %12, %27 : vector<4x16xf32>
    %c17 = arith.constant 17 : index
    %c0_21 = arith.constant 0 : index
    %29 = vector.load %arg6[%c17, %c0_21] : memref<128x16xf32, #tpu.memory_space<vmem>>, vector<1x16xf32>
    %30 = vector.broadcast %29 : vector<1x16xf32> to vector<4x16xf32>
    %31 = arith.mulf %20, %30 : vector<4x16xf32>
    %32 = arith.addf %15, %31 : vector<4x16xf32>
    %c25 = arith.constant 25 : index
    %c0_22 = arith.constant 0 : index
    %33 = vector.load %arg6[%c25, %c0_22] : memref<128x16xf32, #tpu.memory_space<vmem>>, vector<1x16xf32>
    %34 = vector.broadcast %33 : vector<1x16xf32> to vector<4x16xf32>
    %35 = arith.mulf %20, %34 : vector<4x16xf32>
    %36 = arith.addf %18, %35 : vector<4x16xf32>
    %c0_23 = arith.constant 0 : index
    %c2 = arith.constant 2 : index
    %c0_24 = arith.constant 0 : index
    %c0_25 = arith.constant 0 : index
    %37 = vector.load %arg4[%c0_23, %c2, %c0_24, %c0_25] : memref<1x8x8x16xf32, #tpu.memory_space<vmem>>, vector<1x1x4x16xf32>
    %38 = vector.shape_cast %37 : vector<1x1x4x16xf32> to vector<4x16xf32>
    %c2_26 = arith.constant 2 : index
    %c0_27 = arith.constant 0 : index
    %39 = vector.load %arg6[%c2_26, %c0_27] : memref<128x16xf32, #tpu.memory_space<vmem>>, vector<1x16xf32>
    %40 = vector.broadcast %39 : vector<1x16xf32> to vector<4x16xf32>
    %41 = arith.mulf %38, %40 : vector<4x16xf32>
    %42 = arith.addf %24, %41 : vector<4x16xf32>
    %c10 = arith.constant 10 : index
    %c0_28 = arith.constant 0 : index
    %43 = vector.load %arg6[%c10, %c0_28] : memref<128x16xf32, #tpu.memory_space<vmem>>, vector<1x16xf32>
    %44 = vector.broadcast %43 : vector<1x16xf32> to vector<4x16xf32>
    %45 = arith.mulf %38, %44 : vector<4x16xf32>
    %46 = arith.addf %28, %45 : vector<4x16xf32>
    %c18 = arith.constant 18 : index
    %c0_29 = arith.constant 0 : index
    %47 = vector.load %arg6[%c18, %c0_29] : memref<128x16xf32, #tpu.memory_space<vmem>>, vector<1x16xf32>
    %48 = vector.broadcast %47 : vector<1x16xf32> to vector<4x16xf32>
    %49 = arith.mulf %38, %48 : vector<4x16xf32>
    %50 = arith.addf %32, %49 : vector<4x16xf32>
    %c26 = arith.constant 26 : index
    %c0_30 = arith.constant 0 : index
    %51 = vector.load %arg6[%c26, %c0_30] : memref<128x16xf32, #tpu.memory_space<vmem>>, vector<1x16xf32>
    %52 = vector.broadcast %51 : vector<1x16xf32> to vector<4x16xf32>
    %53 = arith.mulf %38, %52 : vector<4x16xf32>
    %54 = arith.addf %36, %53 : vector<4x16xf32>
    %c0_31 = arith.constant 0 : index
    %c3 = arith.constant 3 : index
    %c0_32 = arith.constant 0 : index
    %c0_33 = arith.constant 0 : index
    %55 = vector.load %arg4[%c0_31, %c3, %c0_32, %c0_33] : memref<1x8x8x16xf32, #tpu.memory_space<vmem>>, vector<1x1x4x16xf32>
    %56 = vector.shape_cast %55 : vector<1x1x4x16xf32> to vector<4x16xf32>
    %c3_34 = arith.constant 3 : index
    %c0_35 = arith.constant 0 : index
    %57 = vector.load %arg6[%c3_34, %c0_35] : memref<128x16xf32, #tpu.memory_space<vmem>>, vector<1x16xf32>
    %58 = vector.broadcast %57 : vector<1x16xf32> to vector<4x16xf32>
    %59 = arith.mulf %56, %58 : vector<4x16xf32>
    %60 = arith.addf %42, %59 : vector<4x16xf32>
    %c11 = arith.constant 11 : index
    %c0_36 = arith.constant 0 : index
    %61 = vector.load %arg6[%c11, %c0_36] : memref<128x16xf32, #tpu.memory_space<vmem>>, vector<1x16xf32>
    %62 = vector.broadcast %61 : vector<1x16xf32> to vector<4x16xf32>
    %63 = arith.mulf %56, %62 : vector<4x16xf32>
    %64 = arith.addf %46, %63 : vector<4x16xf32>
    %c19 = arith.constant 19 : index
    %c0_37 = arith.constant 0 : index
    %65 = vector.load %arg6[%c19, %c0_37] : memref<128x16xf32, #tpu.memory_space<vmem>>, vector<1x16xf32>
    %66 = vector.broadcast %65 : vector<1x16xf32> to vector<4x16xf32>
    %67 = arith.mulf %56, %66 : vector<4x16xf32>
    %68 = arith.addf %50, %67 : vector<4x16xf32>
    %c27 = arith.constant 27 : index
    %c0_38 = arith.constant 0 : index
    %69 = vector.load %arg6[%c27, %c0_38] : memref<128x16xf32, #tpu.memory_space<vmem>>, vector<1x16xf32>
    %70 = vector.broadcast %69 : vector<1x16xf32> to vector<4x16xf32>
    %71 = arith.mulf %56, %70 : vector<4x16xf32>
    %72 = arith.addf %54, %71 : vector<4x16xf32>
    %c0_39 = arith.constant 0 : index
    %c4 = arith.constant 4 : index
    %c0_40 = arith.constant 0 : index
    %c0_41 = arith.constant 0 : index
    %73 = vector.load %arg4[%c0_39, %c4, %c0_40, %c0_41] : memref<1x8x8x16xf32, #tpu.memory_space<vmem>>, vector<1x1x4x16xf32>
    %74 = vector.shape_cast %73 : vector<1x1x4x16xf32> to vector<4x16xf32>
    %c4_42 = arith.constant 4 : index
    %c0_43 = arith.constant 0 : index
    %75 = vector.load %arg6[%c4_42, %c0_43] : memref<128x16xf32, #tpu.memory_space<vmem>>, vector<1x16xf32>
    %76 = vector.broadcast %75 : vector<1x16xf32> to vector<4x16xf32>
    %77 = arith.mulf %74, %76 : vector<4x16xf32>
    %78 = arith.addf %60, %77 : vector<4x16xf32>
    %c12 = arith.constant 12 : index
    %c0_44 = arith.constant 0 : index
    %79 = vector.load %arg6[%c12, %c0_44] : memref<128x16xf32, #tpu.memory_space<vmem>>, vector<1x16xf32>
    %80 = vector.broadcast %79 : vector<1x16xf32> to vector<4x16xf32>
    %81 = arith.mulf %74, %80 : vector<4x16xf32>
    %82 = arith.addf %64, %81 : vector<4x16xf32>
    %c20 = arith.constant 20 : index
    %c0_45 = arith.constant 0 : index
    %83 = vector.load %arg6[%c20, %c0_45] : memref<128x16xf32, #tpu.memory_space<vmem>>, vector<1x16xf32>
    %84 = vector.broadcast %83 : vector<1x16xf32> to vector<4x16xf32>
    %85 = arith.mulf %74, %84 : vector<4x16xf32>
    %86 = arith.addf %68, %85 : vector<4x16xf32>
    %c28 = arith.constant 28 : index
    %c0_46 = arith.constant 0 : index
    %87 = vector.load %arg6[%c28, %c0_46] : memref<128x16xf32, #tpu.memory_space<vmem>>, vector<1x16xf32>
    %88 = vector.broadcast %87 : vector<1x16xf32> to vector<4x16xf32>
    %89 = arith.mulf %74, %88 : vector<4x16xf32>
    %90 = arith.addf %72, %89 : vector<4x16xf32>
    %c0_47 = arith.constant 0 : index
    %c5 = arith.constant 5 : index
    %c0_48 = arith.constant 0 : index
    %c0_49 = arith.constant 0 : index
    %91 = vector.load %arg4[%c0_47, %c5, %c0_48, %c0_49] : memref<1x8x8x16xf32, #tpu.memory_space<vmem>>, vector<1x1x4x16xf32>
    %92 = vector.shape_cast %91 : vector<1x1x4x16xf32> to vector<4x16xf32>
    %c5_50 = arith.constant 5 : index
    %c0_51 = arith.constant 0 : index
    %93 = vector.load %arg6[%c5_50, %c0_51] : memref<128x16xf32, #tpu.memory_space<vmem>>, vector<1x16xf32>
    %94 = vector.broadcast %93 : vector<1x16xf32> to vector<4x16xf32>
    %95 = arith.mulf %92, %94 : vector<4x16xf32>
    %96 = arith.addf %78, %95 : vector<4x16xf32>
    %c13 = arith.constant 13 : index
    %c0_52 = arith.constant 0 : index
    %97 = vector.load %arg6[%c13, %c0_52] : memref<128x16xf32, #tpu.memory_space<vmem>>, vector<1x16xf32>
    %98 = vector.broadcast %97 : vector<1x16xf32> to vector<4x16xf32>
    %99 = arith.mulf %92, %98 : vector<4x16xf32>
    %100 = arith.addf %82, %99 : vector<4x16xf32>
    %c21 = arith.constant 21 : index
    %c0_53 = arith.constant 0 : index
    %101 = vector.load %arg6[%c21, %c0_53] : memref<128x16xf32, #tpu.memory_space<vmem>>, vector<1x16xf32>
    %102 = vector.broadcast %101 : vector<1x16xf32> to vector<4x16xf32>
    %103 = arith.mulf %92, %102 : vector<4x16xf32>
    %104 = arith.addf %86, %103 : vector<4x16xf32>
    %c29 = arith.constant 29 : index
    %c0_54 = arith.constant 0 : index
    %105 = vector.load %arg6[%c29, %c0_54] : memref<128x16xf32, #tpu.memory_space<vmem>>, vector<1x16xf32>
    %106 = vector.broadcast %105 : vector<1x16xf32> to vector<4x16xf32>
    %107 = arith.mulf %92, %106 : vector<4x16xf32>
    %108 = arith.addf %90, %107 : vector<4x16xf32>
    %c0_55 = arith.constant 0 : index
    %c6 = arith.constant 6 : index
    %c0_56 = arith.constant 0 : index
    %c0_57 = arith.constant 0 : index
    %109 = vector.load %arg4[%c0_55, %c6, %c0_56, %c0_57] : memref<1x8x8x16xf32, #tpu.memory_space<vmem>>, vector<1x1x4x16xf32>
    %110 = vector.shape_cast %109 : vector<1x1x4x16xf32> to vector<4x16xf32>
    %c6_58 = arith.constant 6 : index
    %c0_59 = arith.constant 0 : index
    %111 = vector.load %arg6[%c6_58, %c0_59] : memref<128x16xf32, #tpu.memory_space<vmem>>, vector<1x16xf32>
    %112 = vector.broadcast %111 : vector<1x16xf32> to vector<4x16xf32>
    %113 = arith.mulf %110, %112 : vector<4x16xf32>
    %114 = arith.addf %96, %113 : vector<4x16xf32>
    %c14 = arith.constant 14 : index
    %c0_60 = arith.constant 0 : index
    %115 = vector.load %arg6[%c14, %c0_60] : memref<128x16xf32, #tpu.memory_space<vmem>>, vector<1x16xf32>
    %116 = vector.broadcast %115 : vector<1x16xf32> to vector<4x16xf32>
    %117 = arith.mulf %110, %116 : vector<4x16xf32>
    %118 = arith.addf %100, %117 : vector<4x16xf32>
    %c22 = arith.constant 22 : index
    %c0_61 = arith.constant 0 : index
    %119 = vector.load %arg6[%c22, %c0_61] : memref<128x16xf32, #tpu.memory_space<vmem>>, vector<1x16xf32>
    %120 = vector.broadcast %119 : vector<1x16xf32> to vector<4x16xf32>
    %121 = arith.mulf %110, %120 : vector<4x16xf32>
    %122 = arith.addf %104, %121 : vector<4x16xf32>
    %c30 = arith.constant 30 : index
    %c0_62 = arith.constant 0 : index
    %123 = vector.load %arg6[%c30, %c0_62] : memref<128x16xf32, #tpu.memory_space<vmem>>, vector<1x16xf32>
    %124 = vector.broadcast %123 : vector<1x16xf32> to vector<4x16xf32>
    %125 = arith.mulf %110, %124 : vector<4x16xf32>
    %126 = arith.addf %108, %125 : vector<4x16xf32>
    %c0_63 = arith.constant 0 : index
    %c7 = arith.constant 7 : index
    %c0_64 = arith.constant 0 : index
    %c0_65 = arith.constant 0 : index
    %127 = vector.load %arg4[%c0_63, %c7, %c0_64, %c0_65] : memref<1x8x8x16xf32, #tpu.memory_space<vmem>>, vector<1x1x4x16xf32>
    %128 = vector.shape_cast %127 : vector<1x1x4x16xf32> to vector<4x16xf32>
    %c7_66 = arith.constant 7 : index
    %c0_67 = arith.constant 0 : index
    %129 = vector.load %arg6[%c7_66, %c0_67] : memref<128x16xf32, #tpu.memory_space<vmem>>, vector<1x16xf32>
    %130 = vector.broadcast %129 : vector<1x16xf32> to vector<4x16xf32>
    %131 = arith.mulf %128, %130 : vector<4x16xf32>
    %132 = arith.addf %114, %131 : vector<4x16xf32>
    %c15 = arith.constant 15 : index
    %c0_68 = arith.constant 0 : index
    %133 = vector.load %arg6[%c15, %c0_68] : memref<128x16xf32, #tpu.memory_space<vmem>>, vector<1x16xf32>
    %134 = vector.broadcast %133 : vector<1x16xf32> to vector<4x16xf32>
    %135 = arith.mulf %128, %134 : vector<4x16xf32>
    %136 = arith.addf %118, %135 : vector<4x16xf32>
    %c23 = arith.constant 23 : index
    %c0_69 = arith.constant 0 : index
    %137 = vector.load %arg6[%c23, %c0_69] : memref<128x16xf32, #tpu.memory_space<vmem>>, vector<1x16xf32>
    %138 = vector.broadcast %137 : vector<1x16xf32> to vector<4x16xf32>
    %139 = arith.mulf %128, %138 : vector<4x16xf32>
    %140 = arith.addf %122, %139 : vector<4x16xf32>
    %c31 = arith.constant 31 : index
    %c0_70 = arith.constant 0 : index
    %141 = vector.load %arg6[%c31, %c0_70] : memref<128x16xf32, #tpu.memory_space<vmem>>, vector<1x16xf32>
    %142 = vector.broadcast %141 : vector<1x16xf32> to vector<4x16xf32>
    %143 = arith.mulf %128, %142 : vector<4x16xf32>
    %144 = arith.addf %126, %143 : vector<4x16xf32>
    %c0_71 = arith.constant 0 : index
    %c0_72 = arith.constant 0 : index
    %c0_73 = arith.constant 0 : index
    %c0_74 = arith.constant 0 : index
    %145 = vector.load %arg5[%c0_71, %c0_72, %c0_73, %c0_74] : memref<1x8x8x16xf32, #tpu.memory_space<vmem>>, vector<1x1x4x16xf32>
    %146 = vector.shape_cast %145 : vector<1x1x4x16xf32> to vector<4x16xf32>
    %147 = vector.shape_cast %132 : vector<4x16xf32> to vector<1x1x4x16xf32>
    tpu.vector_store %arg5[%c0_71, %c0_72, %c0_73, %c0_74], %147 {strides = array<i32>} : memref<1x8x8x16xf32, #tpu.memory_space<vmem>>, vector<1x1x4x16xf32>,
    %c0_75 = arith.constant 0 : index
    %c1_76 = arith.constant 1 : index
    %c0_77 = arith.constant 0 : index
    %c0_78 = arith.constant 0 : index
    %148 = vector.load %arg5[%c0_75, %c1_76, %c0_77, %c0_78] : memref<1x8x8x16xf32, #tpu.memory_space<vmem>>, vector<1x1x4x16xf32>
    %149 = vector.shape_cast %148 : vector<1x1x4x16xf32> to vector<4x16xf32>
    %150 = vector.shape_cast %136 : vector<4x16xf32> to vector<1x1x4x16xf32>
    tpu.vector_store %arg5[%c0_75, %c1_76, %c0_77, %c0_78], %150 {strides = array<i32>} : memref<1x8x8x16xf32, #tpu.memory_space<vmem>>, vector<1x1x4x16xf32>,
    %c0_79 = arith.constant 0 : index
    %c2_80 = arith.constant 2 : index
    %c0_81 = arith.constant 0 : index
    %c0_82 = arith.constant 0 : index
    %151 = vector.load %arg5[%c0_79, %c2_80, %c0_81, %c0_82] : memref<1x8x8x16xf32, #tpu.memory_space<vmem>>, vector<1x1x4x16xf32>
    %152 = vector.shape_cast %151 : vector<1x1x4x16xf32> to vector<4x16xf32>
    %153 = vector.shape_cast %140 : vector<4x16xf32> to vector<1x1x4x16xf32>
    tpu.vector_store %arg5[%c0_79, %c2_80, %c0_81, %c0_82], %153 {strides = array<i32>} : memref<1x8x8x16xf32, #tpu.memory_space<vmem>>, vector<1x1x4x16xf32>,
    %c0_83 = arith.constant 0 : index
    %c3_84 = arith.constant 3 : index
    %c0_85 = arith.constant 0 : index
    %c0_86 = arith.constant 0 : index
    %154 = vector.load %arg5[%c0_83, %c3_84, %c0_85, %c0_86] : memref<1x8x8x16xf32, #tpu.memory_space<vmem>>, vector<1x1x4x16xf32>
    %155 = vector.shape_cast %154 : vector<1x1x4x16xf32> to vector<4x16xf32>
    %156 = vector.shape_cast %144 : vector<4x16xf32> to vector<1x1x4x16xf32>
    tpu.vector_store %arg5[%c0_83, %c3_84, %c0_85, %c0_86], %156 {strides = array<i32>} : memref<1x8x8x16xf32, #tpu.memory_space<vmem>>, vector<1x1x4x16xf32>,
    %c0_87 = arith.constant 0 : index
    %c0_88 = arith.constant 0 : index
    %c0_89 = arith.constant 0 : index
    %c0_90 = arith.constant 0 : index
    %157 = vector.load %arg4[%c0_87, %c0_88, %c0_89, %c0_90] : memref<1x8x8x16xf32, #tpu.memory_space<vmem>>, vector<1x1x4x16xf32>
    %158 = vector.shape_cast %157 : vector<1x1x4x16xf32> to vector<4x16xf32>
    %c32 = arith.constant 32 : index
    %c0_91 = arith.constant 0 : index
    %159 = vector.load %arg6[%c32, %c0_91] : memref<128x16xf32, #tpu.memory_space<vmem>>, vector<1x16xf32>
    %160 = vector.broadcast %159 : vector<1x16xf32> to vector<4x16xf32>
    %161 = arith.mulf %158, %160 : vector<4x16xf32>
    %c40 = arith.constant 40 : index
    %c0_92 = arith.constant 0 : index
    %162 = vector.load %arg6[%c40, %c0_92] : memref<128x16xf32, #tpu.memory_space<vmem>>, vector<1x16xf32>
    %163 = vector.broadcast %162 : vector<1x16xf32> to vector<4x16xf32>
    %164 = arith.mulf %158, %163 : vector<4x16xf32>
    %c48 = arith.constant 48 : index
    %c0_93 = arith.constant 0 : index
    %165 = vector.load %arg6[%c48, %c0_93] : memref<128x16xf32, #tpu.memory_space<vmem>>, vector<1x16xf32>
    %166 = vector.broadcast %165 : vector<1x16xf32> to vector<4x16xf32>
    %167 = arith.mulf %158, %166 : vector<4x16xf32>
    %c56 = arith.constant 56 : index
    %c0_94 = arith.constant 0 : index
    %168 = vector.load %arg6[%c56, %c0_94] : memref<128x16xf32, #tpu.memory_space<vmem>>, vector<1x16xf32>
    %169 = vector.broadcast %168 : vector<1x16xf32> to vector<4x16xf32>
    %170 = arith.mulf %158, %169 : vector<4x16xf32>
    %c0_95 = arith.constant 0 : index
    %c1_96 = arith.constant 1 : index
    %c0_97 = arith.constant 0 : index
    %c0_98 = arith.constant 0 : index
    %171 = vector.load %arg4[%c0_95, %c1_96, %c0_97, %c0_98] : memref<1x8x8x16xf32, #tpu.memory_space<vmem>>, vector<1x1x4x16xf32>
    %172 = vector.shape_cast %171 : vector<1x1x4x16xf32> to vector<4x16xf32>
    %c33 = arith.constant 33 : index
    %c0_99 = arith.constant 0 : index
    %173 = vector.load %arg6[%c33, %c0_99] : memref<128x16xf32, #tpu.memory_space<vmem>>, vector<1x16xf32>
    %174 = vector.broadcast %173 : vector<1x16xf32> to vector<4x16xf32>
    %175 = arith.mulf %172, %174 : vector<4x16xf32>
    %176 = arith.addf %161, %175 : vector<4x16xf32>
    %c41 = arith.constant 41 : index
    %c0_100 = arith.constant 0 : index
    %177 = vector.load %arg6[%c41, %c0_100] : memref<128x16xf32, #tpu.memory_space<vmem>>, vector<1x16xf32>
    %178 = vector.broadcast %177 : vector<1x16xf32> to vector<4x16xf32>
    %179 = arith.mulf %172, %178 : vector<4x16xf32>
    %180 = arith.addf %164, %179 : vector<4x16xf32>
    %c49 = arith.constant 49 : index
    %c0_101 = arith.constant 0 : index
    %181 = vector.load %arg6[%c49, %c0_101] : memref<128x16xf32, #tpu.memory_space<vmem>>, vector<1x16xf32>
    %182 = vector.broadcast %181 : vector<1x16xf32> to vector<4x16xf32>
    %183 = arith.mulf %172, %182 : vector<4x16xf32>
    %184 = arith.addf %167, %183 : vector<4x16xf32>
    %c57 = arith.constant 57 : index
    %c0_102 = arith.constant 0 : index
    %185 = vector.load %arg6[%c57, %c0_102] : memref<128x16xf32, #tpu.memory_space<vmem>>, vector<1x16xf32>
    %186 = vector.broadcast %185 : vector<1x16xf32> to vector<4x16xf32>
    %187 = arith.mulf %172, %186 : vector<4x16xf32>
    %188 = arith.addf %170, %187 : vector<4x16xf32>
    %c0_103 = arith.constant 0 : index
    %c2_104 = arith.constant 2 : index
    %c0_105 = arith.constant 0 : index
    %c0_106 = arith.constant 0 : index
    %189 = vector.load %arg4[%c0_103, %c2_104, %c0_105, %c0_106] : memref<1x8x8x16xf32, #tpu.memory_space<vmem>>, vector<1x1x4x16xf32>
    %190 = vector.shape_cast %189 : vector<1x1x4x16xf32> to vector<4x16xf32>
    %c34 = arith.constant 34 : index
    %c0_107 = arith.constant 0 : index
    %191 = vector.load %arg6[%c34, %c0_107] : memref<128x16xf32, #tpu.memory_space<vmem>>, vector<1x16xf32>
    %192 = vector.broadcast %191 : vector<1x16xf32> to vector<4x16xf32>
    %193 = arith.mulf %190, %192 : vector<4x16xf32>
    %194 = arith.addf %176, %193 : vector<4x16xf32>
    %c42 = arith.constant 42 : index
    %c0_108 = arith.constant 0 : index
    %195 = vector.load %arg6[%c42, %c0_108] : memref<128x16xf32, #tpu.memory_space<vmem>>, vector<1x16xf32>
    %196 = vector.broadcast %195 : vector<1x16xf32> to vector<4x16xf32>
    %197 = arith.mulf %190, %196 : vector<4x16xf32>
    %198 = arith.addf %180, %197 : vector<4x16xf32>
    %c50 = arith.constant 50 : index
    %c0_109 = arith.constant 0 : index
    %199 = vector.load %arg6[%c50, %c0_109] : memref<128x16xf32, #tpu.memory_space<vmem>>, vector<1x16xf32>
    %200 = vector.broadcast %199 : vector<1x16xf32> to vector<4x16xf32>
    %201 = arith.mulf %190, %200 : vector<4x16xf32>
    %202 = arith.addf %184, %201 : vector<4x16xf32>
    %c58 = arith.constant 58 : index
    %c0_110 = arith.constant 0 : index
    %203 = vector.load %arg6[%c58, %c0_110] : memref<128x16xf32, #tpu.memory_space<vmem>>, vector<1x16xf32>
    %204 = vector.broadcast %203 : vector<1x16xf32> to vector<4x16xf32>
    %205 = arith.mulf %190, %204 : vector<4x16xf32>
    %206 = arith.addf %188, %205 : vector<4x16xf32>
    %c0_111 = arith.constant 0 : index
    %c3_112 = arith.constant 3 : index
    %c0_113 = arith.constant 0 : index
    %c0_114 = arith.constant 0 : index
    %207 = vector.load %arg4[%c0_111, %c3_112, %c0_113, %c0_114] : memref<1x8x8x16xf32, #tpu.memory_space<vmem>>, vector<1x1x4x16xf32>
    %208 = vector.shape_cast %207 : vector<1x1x4x16xf32> to vector<4x16xf32>
    %c35 = arith.constant 35 : index
    %c0_115 = arith.constant 0 : index
    %209 = vector.load %arg6[%c35, %c0_115] : memref<128x16xf32, #tpu.memory_space<vmem>>, vector<1x16xf32>
    %210 = vector.broadcast %209 : vector<1x16xf32> to vector<4x16xf32>
    %211 = arith.mulf %208, %210 : vector<4x16xf32>
    %212 = arith.addf %194, %211 : vector<4x16xf32>
    %c43 = arith.constant 43 : index
    %c0_116 = arith.constant 0 : index
    %213 = vector.load %arg6[%c43, %c0_116] : memref<128x16xf32, #tpu.memory_space<vmem>>, vector<1x16xf32>
    %214 = vector.broadcast %213 : vector<1x16xf32> to vector<4x16xf32>
    %215 = arith.mulf %208, %214 : vector<4x16xf32>
    %216 = arith.addf %198, %215 : vector<4x16xf32>
    %c51 = arith.constant 51 : index
    %c0_117 = arith.constant 0 : index
    %217 = vector.load %arg6[%c51, %c0_117] : memref<128x16xf32, #tpu.memory_space<vmem>>, vector<1x16xf32>
    %218 = vector.broadcast %217 : vector<1x16xf32> to vector<4x16xf32>
    %219 = arith.mulf %208, %218 : vector<4x16xf32>
    %220 = arith.addf %202, %219 : vector<4x16xf32>
    %c59 = arith.constant 59 : index
    %c0_118 = arith.constant 0 : index
    %221 = vector.load %arg6[%c59, %c0_118] : memref<128x16xf32, #tpu.memory_space<vmem>>, vector<1x16xf32>
    %222 = vector.broadcast %221 : vector<1x16xf32> to vector<4x16xf32>
    %223 = arith.mulf %208, %222 : vector<4x16xf32>
    %224 = arith.addf %206, %223 : vector<4x16xf32>
    %c0_119 = arith.constant 0 : index
    %c4_120 = arith.constant 4 : index
    %c0_121 = arith.constant 0 : index
    %c0_122 = arith.constant 0 : index
    %225 = vector.load %arg4[%c0_119, %c4_120, %c0_121, %c0_122] : memref<1x8x8x16xf32, #tpu.memory_space<vmem>>, vector<1x1x4x16xf32>
    %226 = vector.shape_cast %225 : vector<1x1x4x16xf32> to vector<4x16xf32>
    %c36 = arith.constant 36 : index
    %c0_123 = arith.constant 0 : index
    %227 = vector.load %arg6[%c36, %c0_123] : memref<128x16xf32, #tpu.memory_space<vmem>>, vector<1x16xf32>
    %228 = vector.broadcast %227 : vector<1x16xf32> to vector<4x16xf32>
    %229 = arith.mulf %226, %228 : vector<4x16xf32>
    %230 = arith.addf %212, %229 : vector<4x16xf32>
    %c44 = arith.constant 44 : index
    %c0_124 = arith.constant 0 : index
    %231 = vector.load %arg6[%c44, %c0_124] : memref<128x16xf32, #tpu.memory_space<vmem>>, vector<1x16xf32>
    %232 = vector.broadcast %231 : vector<1x16xf32> to vector<4x16xf32>
    %233 = arith.mulf %226, %232 : vector<4x16xf32>
    %234 = arith.addf %216, %233 : vector<4x16xf32>
    %c52 = arith.constant 52 : index
    %c0_125 = arith.constant 0 : index
    %235 = vector.load %arg6[%c52, %c0_125] : memref<128x16xf32, #tpu.memory_space<vmem>>, vector<1x16xf32>
    %236 = vector.broadcast %235 : vector<1x16xf32> to vector<4x16xf32>
    %237 = arith.mulf %226, %236 : vector<4x16xf32>
    %238 = arith.addf %220, %237 : vector<4x16xf32>
    %c60 = arith.constant 60 : index
    %c0_126 = arith.constant 0 : index
    %239 = vector.load %arg6[%c60, %c0_126] : memref<128x16xf32, #tpu.memory_space<vmem>>, vector<1x16xf32>
    %240 = vector.broadcast %239 : vector<1x16xf32> to vector<4x16xf32>
    %241 = arith.mulf %226, %240 : vector<4x16xf32>
    %242 = arith.addf %224, %241 : vector<4x16xf32>
    %c0_127 = arith.constant 0 : index
    %c5_128 = arith.constant 5 : index
    %c0_129 = arith.constant 0 : index
    %c0_130 = arith.constant 0 : index
    %243 = vector.load %arg4[%c0_127, %c5_128, %c0_129, %c0_130] : memref<1x8x8x16xf32, #tpu.memory_space<vmem>>, vector<1x1x4x16xf32>
    %244 = vector.shape_cast %243 : vector<1x1x4x16xf32> to vector<4x16xf32>
    %c37 = arith.constant 37 : index
    %c0_131 = arith.constant 0 : index
    %245 = vector.load %arg6[%c37, %c0_131] : memref<128x16xf32, #tpu.memory_space<vmem>>, vector<1x16xf32>
    %246 = vector.broadcast %245 : vector<1x16xf32> to vector<4x16xf32>
    %247 = arith.mulf %244, %246 : vector<4x16xf32>
    %248 = arith.addf %230, %247 : vector<4x16xf32>
    %c45 = arith.constant 45 : index
    %c0_132 = arith.constant 0 : index
    %249 = vector.load %arg6[%c45, %c0_132] : memref<128x16xf32, #tpu.memory_space<vmem>>, vector<1x16xf32>
    %250 = vector.broadcast %249 : vector<1x16xf32> to vector<4x16xf32>
    %251 = arith.mulf %244, %250 : vector<4x16xf32>
    %252 = arith.addf %234, %251 : vector<4x16xf32>
    %c53 = arith.constant 53 : index
    %c0_133 = arith.constant 0 : index
    %253 = vector.load %arg6[%c53, %c0_133] : memref<128x16xf32, #tpu.memory_space<vmem>>, vector<1x16xf32>
    %254 = vector.broadcast %253 : vector<1x16xf32> to vector<4x16xf32>
    %255 = arith.mulf %244, %254 : vector<4x16xf32>
    %256 = arith.addf %238, %255 : vector<4x16xf32>
    %c61 = arith.constant 61 : index
    %c0_134 = arith.constant 0 : index
    %257 = vector.load %arg6[%c61, %c0_134] : memref<128x16xf32, #tpu.memory_space<vmem>>, vector<1x16xf32>
    %258 = vector.broadcast %257 : vector<1x16xf32> to vector<4x16xf32>
    %259 = arith.mulf %244, %258 : vector<4x16xf32>
    %260 = arith.addf %242, %259 : vector<4x16xf32>
    %c0_135 = arith.constant 0 : index
    %c6_136 = arith.constant 6 : index
    %c0_137 = arith.constant 0 : index
    %c0_138 = arith.constant 0 : index
    %261 = vector.load %arg4[%c0_135, %c6_136, %c0_137, %c0_138] : memref<1x8x8x16xf32, #tpu.memory_space<vmem>>, vector<1x1x4x16xf32>
    %262 = vector.shape_cast %261 : vector<1x1x4x16xf32> to vector<4x16xf32>
    %c38 = arith.constant 38 : index
    %c0_139 = arith.constant 0 : index
    %263 = vector.load %arg6[%c38, %c0_139] : memref<128x16xf32, #tpu.memory_space<vmem>>, vector<1x16xf32>
    %264 = vector.broadcast %263 : vector<1x16xf32> to vector<4x16xf32>
    %265 = arith.mulf %262, %264 : vector<4x16xf32>
    %266 = arith.addf %248, %265 : vector<4x16xf32>
    %c46 = arith.constant 46 : index
    %c0_140 = arith.constant 0 : index
    %267 = vector.load %arg6[%c46, %c0_140] : memref<128x16xf32, #tpu.memory_space<vmem>>, vector<1x16xf32>
    %268 = vector.broadcast %267 : vector<1x16xf32> to vector<4x16xf32>
    %269 = arith.mulf %262, %268 : vector<4x16xf32>
    %270 = arith.addf %252, %269 : vector<4x16xf32>
    %c54 = arith.constant 54 : index
    %c0_141 = arith.constant 0 : index
    %271 = vector.load %arg6[%c54, %c0_141] : memref<128x16xf32, #tpu.memory_space<vmem>>, vector<1x16xf32>
    %272 = vector.broadcast %271 : vector<1x16xf32> to vector<4x16xf32>
    %273 = arith.mulf %262, %272 : vector<4x16xf32>
    %274 = arith.addf %256, %273 : vector<4x16xf32>
    %c62 = arith.constant 62 : index
    %c0_142 = arith.constant 0 : index
    %275 = vector.load %arg6[%c62, %c0_142] : memref<128x16xf32, #tpu.memory_space<vmem>>, vector<1x16xf32>
    %276 = vector.broadcast %275 : vector<1x16xf32> to vector<4x16xf32>
    %277 = arith.mulf %262, %276 : vector<4x16xf32>
    %278 = arith.addf %260, %277 : vector<4x16xf32>
    %c0_143 = arith.constant 0 : index
    %c7_144 = arith.constant 7 : index
    %c0_145 = arith.constant 0 : index
    %c0_146 = arith.constant 0 : index
    %279 = vector.load %arg4[%c0_143, %c7_144, %c0_145, %c0_146] : memref<1x8x8x16xf32, #tpu.memory_space<vmem>>, vector<1x1x4x16xf32>
    %280 = vector.shape_cast %279 : vector<1x1x4x16xf32> to vector<4x16xf32>
    %c39 = arith.constant 39 : index
    %c0_147 = arith.constant 0 : index
    %281 = vector.load %arg6[%c39, %c0_147] : memref<128x16xf32, #tpu.memory_space<vmem>>, vector<1x16xf32>
    %282 = vector.broadcast %281 : vector<1x16xf32> to vector<4x16xf32>
    %283 = arith.mulf %280, %282 : vector<4x16xf32>
    %284 = arith.addf %266, %283 : vector<4x16xf32>
    %c47 = arith.constant 47 : index
    %c0_148 = arith.constant 0 : index
    %285 = vector.load %arg6[%c47, %c0_148] : memref<128x16xf32, #tpu.memory_space<vmem>>, vector<1x16xf32>
    %286 = vector.broadcast %285 : vector<1x16xf32> to vector<4x16xf32>
    %287 = arith.mulf %280, %286 : vector<4x16xf32>
    %288 = arith.addf %270, %287 : vector<4x16xf32>
    %c55 = arith.constant 55 : index
    %c0_149 = arith.constant 0 : index
    %289 = vector.load %arg6[%c55, %c0_149] : memref<128x16xf32, #tpu.memory_space<vmem>>, vector<1x16xf32>
    %290 = vector.broadcast %289 : vector<1x16xf32> to vector<4x16xf32>
    %291 = arith.mulf %280, %290 : vector<4x16xf32>
    %292 = arith.addf %274, %291 : vector<4x16xf32>
    %c63 = arith.constant 63 : index
    %c0_150 = arith.constant 0 : index
    %293 = vector.load %arg6[%c63, %c0_150] : memref<128x16xf32, #tpu.memory_space<vmem>>, vector<1x16xf32>
    %294 = vector.broadcast %293 : vector<1x16xf32> to vector<4x16xf32>
    %295 = arith.mulf %280, %294 : vector<4x16xf32>
    %296 = arith.addf %278, %295 : vector<4x16xf32>
    %c0_151 = arith.constant 0 : index
    %c4_152 = arith.constant 4 : index
    %c0_153 = arith.constant 0 : index
    %c0_154 = arith.constant 0 : index
    %297 = vector.load %arg5[%c0_151, %c4_152, %c0_153, %c0_154] : memref<1x8x8x16xf32, #tpu.memory_space<vmem>>, vector<1x1x4x16xf32>
    %298 = vector.shape_cast %297 : vector<1x1x4x16xf32> to vector<4x16xf32>
    %299 = vector.shape_cast %284 : vector<4x16xf32> to vector<1x1x4x16xf32>
    tpu.vector_store %arg5[%c0_151, %c4_152, %c0_153, %c0_154], %299 {strides = array<i32>} : memref<1x8x8x16xf32, #tpu.memory_space<vmem>>, vector<1x1x4x16xf32>,
    %c0_155 = arith.constant 0 : index
    %c5_156 = arith.constant 5 : index
    %c0_157 = arith.constant 0 : index
    %c0_158 = arith.constant 0 : index
    %300 = vector.load %arg5[%c0_155, %c5_156, %c0_157, %c0_158] : memref<1x8x8x16xf32, #tpu.memory_space<vmem>>, vector<1x1x4x16xf32>
    %301 = vector.shape_cast %300 : vector<1x1x4x16xf32> to vector<4x16xf32>
    %302 = vector.shape_cast %288 : vector<4x16xf32> to vector<1x1x4x16xf32>
    tpu.vector_store %arg5[%c0_155, %c5_156, %c0_157, %c0_158], %302 {strides = array<i32>} : memref<1x8x8x16xf32, #tpu.memory_space<vmem>>, vector<1x1x4x16xf32>,
    %c0_159 = arith.constant 0 : index
    %c6_160 = arith.constant 6 : index
    %c0_161 = arith.constant 0 : index
    %c0_162 = arith.constant 0 : index
    %303 = vector.load %arg5[%c0_159, %c6_160, %c0_161, %c0_162] : memref<1x8x8x16xf32, #tpu.memory_space<vmem>>, vector<1x1x4x16xf32>
    %304 = vector.shape_cast %303 : vector<1x1x4x16xf32> to vector<4x16xf32>
    %305 = vector.shape_cast %292 : vector<4x16xf32> to vector<1x1x4x16xf32>
    tpu.vector_store %arg5[%c0_159, %c6_160, %c0_161, %c0_162], %305 {strides = array<i32>} : memref<1x8x8x16xf32, #tpu.memory_space<vmem>>, vector<1x1x4x16xf32>,
    %c0_163 = arith.constant 0 : index
    %c7_164 = arith.constant 7 : index
    %c0_165 = arith.constant 0 : index
    %c0_166 = arith.constant 0 : index
    %306 = vector.load %arg5[%c0_163, %c7_164, %c0_165, %c0_166] : memref<1x8x8x16xf32, #tpu.memory_space<vmem>>, vector<1x1x4x16xf32>
    %307 = vector.shape_cast %306 : vector<1x1x4x16xf32> to vector<4x16xf32>
    %308 = vector.shape_cast %296 : vector<4x16xf32> to vector<1x1x4x16xf32>
    tpu.vector_store %arg5[%c0_163, %c7_164, %c0_165, %c0_166], %308 {strides = array<i32>} : memref<1x8x8x16xf32, #tpu.memory_space<vmem>>, vector<1x1x4x16xf32>,
    %c0_167 = arith.constant 0 : index
    %c0_168 = arith.constant 0 : index
    %c4_169 = arith.constant 4 : index
    %c0_170 = arith.constant 0 : index
    %309 = vector.load %arg4[%c0_167, %c0_168, %c4_169, %c0_170] : memref<1x8x8x16xf32, #tpu.memory_space<vmem>>, vector<1x1x4x16xf32>
    %310 = vector.shape_cast %309 : vector<1x1x4x16xf32> to vector<4x16xf32>
    %c64 = arith.constant 64 : index
    %c0_171 = arith.constant 0 : index
    %311 = vector.load %arg6[%c64, %c0_171] : memref<128x16xf32, #tpu.memory_space<vmem>>, vector<1x16xf32>
    %312 = vector.broadcast %311 : vector<1x16xf32> to vector<4x16xf32>
    %313 = arith.mulf %310, %312 : vector<4x16xf32>
    %c72 = arith.constant 72 : index
    %c0_172 = arith.constant 0 : index
    %314 = vector.load %arg6[%c72, %c0_172] : memref<128x16xf32, #tpu.memory_space<vmem>>, vector<1x16xf32>
    %315 = vector.broadcast %314 : vector<1x16xf32> to vector<4x16xf32>
    %316 = arith.mulf %310, %315 : vector<4x16xf32>
    %c80 = arith.constant 80 : index
    %c0_173 = arith.constant 0 : index
    %317 = vector.load %arg6[%c80, %c0_173] : memref<128x16xf32, #tpu.memory_space<vmem>>, vector<1x16xf32>
    %318 = vector.broadcast %317 : vector<1x16xf32> to vector<4x16xf32>
    %319 = arith.mulf %310, %318 : vector<4x16xf32>
    %c88 = arith.constant 88 : index
    %c0_174 = arith.constant 0 : index
    %320 = vector.load %arg6[%c88, %c0_174] : memref<128x16xf32, #tpu.memory_space<vmem>>, vector<1x16xf32>
    %321 = vector.broadcast %320 : vector<1x16xf32> to vector<4x16xf32>
    %322 = arith.mulf %310, %321 : vector<4x16xf32>
    %c0_175 = arith.constant 0 : index
    %c1_176 = arith.constant 1 : index
    %c4_177 = arith.constant 4 : index
    %c0_178 = arith.constant 0 : index
    %323 = vector.load %arg4[%c0_175, %c1_176, %c4_177, %c0_178] : memref<1x8x8x16xf32, #tpu.memory_space<vmem>>, vector<1x1x4x16xf32>
    %324 = vector.shape_cast %323 : vector<1x1x4x16xf32> to vector<4x16xf32>
    %c65 = arith.constant 65 : index
    %c0_179 = arith.constant 0 : index
    %325 = vector.load %arg6[%c65, %c0_179] : memref<128x16xf32, #tpu.memory_space<vmem>>, vector<1x16xf32>
    %326 = vector.broadcast %325 : vector<1x16xf32> to vector<4x16xf32>
    %327 = arith.mulf %324, %326 : vector<4x16xf32>
    %328 = arith.addf %313, %327 : vector<4x16xf32>
    %c73 = arith.constant 73 : index
    %c0_180 = arith.constant 0 : index
    %329 = vector.load %arg6[%c73, %c0_180] : memref<128x16xf32, #tpu.memory_space<vmem>>, vector<1x16xf32>
    %330 = vector.broadcast %329 : vector<1x16xf32> to vector<4x16xf32>
    %331 = arith.mulf %324, %330 : vector<4x16xf32>
    %332 = arith.addf %316, %331 : vector<4x16xf32>
    %c81 = arith.constant 81 : index
    %c0_181 = arith.constant 0 : index
    %333 = vector.load %arg6[%c81, %c0_181] : memref<128x16xf32, #tpu.memory_space<vmem>>, vector<1x16xf32>
    %334 = vector.broadcast %333 : vector<1x16xf32> to vector<4x16xf32>
    %335 = arith.mulf %324, %334 : vector<4x16xf32>
    %336 = arith.addf %319, %335 : vector<4x16xf32>
    %c89 = arith.constant 89 : index
    %c0_182 = arith.constant 0 : index
    %337 = vector.load %arg6[%c89, %c0_182] : memref<128x16xf32, #tpu.memory_space<vmem>>, vector<1x16xf32>
    %338 = vector.broadcast %337 : vector<1x16xf32> to vector<4x16xf32>
    %339 = arith.mulf %324, %338 : vector<4x16xf32>
    %340 = arith.addf %322, %339 : vector<4x16xf32>
    %c0_183 = arith.constant 0 : index
    %c2_184 = arith.constant 2 : index
    %c4_185 = arith.constant 4 : index
    %c0_186 = arith.constant 0 : index
    %341 = vector.load %arg4[%c0_183, %c2_184, %c4_185, %c0_186] : memref<1x8x8x16xf32, #tpu.memory_space<vmem>>, vector<1x1x4x16xf32>
    %342 = vector.shape_cast %341 : vector<1x1x4x16xf32> to vector<4x16xf32>
    %c66 = arith.constant 66 : index
    %c0_187 = arith.constant 0 : index
    %343 = vector.load %arg6[%c66, %c0_187] : memref<128x16xf32, #tpu.memory_space<vmem>>, vector<1x16xf32>
    %344 = vector.broadcast %343 : vector<1x16xf32> to vector<4x16xf32>
    %345 = arith.mulf %342, %344 : vector<4x16xf32>
    %346 = arith.addf %328, %345 : vector<4x16xf32>
    %c74 = arith.constant 74 : index
    %c0_188 = arith.constant 0 : index
    %347 = vector.load %arg6[%c74, %c0_188] : memref<128x16xf32, #tpu.memory_space<vmem>>, vector<1x16xf32>
    %348 = vector.broadcast %347 : vector<1x16xf32> to vector<4x16xf32>
    %349 = arith.mulf %342, %348 : vector<4x16xf32>
    %350 = arith.addf %332, %349 : vector<4x16xf32>
    %c82 = arith.constant 82 : index
    %c0_189 = arith.constant 0 : index
    %351 = vector.load %arg6[%c82, %c0_189] : memref<128x16xf32, #tpu.memory_space<vmem>>, vector<1x16xf32>
    %352 = vector.broadcast %351 : vector<1x16xf32> to vector<4x16xf32>
    %353 = arith.mulf %342, %352 : vector<4x16xf32>
    %354 = arith.addf %336, %353 : vector<4x16xf32>
    %c90 = arith.constant 90 : index
    %c0_190 = arith.constant 0 : index
    %355 = vector.load %arg6[%c90, %c0_190] : memref<128x16xf32, #tpu.memory_space<vmem>>, vector<1x16xf32>
    %356 = vector.broadcast %355 : vector<1x16xf32> to vector<4x16xf32>
    %357 = arith.mulf %342, %356 : vector<4x16xf32>
    %358 = arith.addf %340, %357 : vector<4x16xf32>
    %c0_191 = arith.constant 0 : index
    %c3_192 = arith.constant 3 : index
    %c4_193 = arith.constant 4 : index
    %c0_194 = arith.constant 0 : index
    %359 = vector.load %arg4[%c0_191, %c3_192, %c4_193, %c0_194] : memref<1x8x8x16xf32, #tpu.memory_space<vmem>>, vector<1x1x4x16xf32>
    %360 = vector.shape_cast %359 : vector<1x1x4x16xf32> to vector<4x16xf32>
    %c67 = arith.constant 67 : index
    %c0_195 = arith.constant 0 : index
    %361 = vector.load %arg6[%c67, %c0_195] : memref<128x16xf32, #tpu.memory_space<vmem>>, vector<1x16xf32>
    %362 = vector.broadcast %361 : vector<1x16xf32> to vector<4x16xf32>
    %363 = arith.mulf %360, %362 : vector<4x16xf32>
    %364 = arith.addf %346, %363 : vector<4x16xf32>
    %c75 = arith.constant 75 : index
    %c0_196 = arith.constant 0 : index
    %365 = vector.load %arg6[%c75, %c0_196] : memref<128x16xf32, #tpu.memory_space<vmem>>, vector<1x16xf32>
    %366 = vector.broadcast %365 : vector<1x16xf32> to vector<4x16xf32>
    %367 = arith.mulf %360, %366 : vector<4x16xf32>
    %368 = arith.addf %350, %367 : vector<4x16xf32>
    %c83 = arith.constant 83 : index
    %c0_197 = arith.constant 0 : index
    %369 = vector.load %arg6[%c83, %c0_197] : memref<128x16xf32, #tpu.memory_space<vmem>>, vector<1x16xf32>
    %370 = vector.broadcast %369 : vector<1x16xf32> to vector<4x16xf32>
    %371 = arith.mulf %360, %370 : vector<4x16xf32>
    %372 = arith.addf %354, %371 : vector<4x16xf32>
    %c91 = arith.constant 91 : index
    %c0_198 = arith.constant 0 : index
    %373 = vector.load %arg6[%c91, %c0_198] : memref<128x16xf32, #tpu.memory_space<vmem>>, vector<1x16xf32>
    %374 = vector.broadcast %373 : vector<1x16xf32> to vector<4x16xf32>
    %375 = arith.mulf %360, %374 : vector<4x16xf32>
    %376 = arith.addf %358, %375 : vector<4x16xf32>
    %c0_199 = arith.constant 0 : index
    %c4_200 = arith.constant 4 : index
    %c4_201 = arith.constant 4 : index
    %c0_202 = arith.constant 0 : index
    %377 = vector.load %arg4[%c0_199, %c4_200, %c4_201, %c0_202] : memref<1x8x8x16xf32, #tpu.memory_space<vmem>>, vector<1x1x4x16xf32>
    %378 = vector.shape_cast %377 : vector<1x1x4x16xf32> to vector<4x16xf32>
    %c68 = arith.constant 68 : index
    %c0_203 = arith.constant 0 : index
    %379 = vector.load %arg6[%c68, %c0_203] : memref<128x16xf32, #tpu.memory_space<vmem>>, vector<1x16xf32>
    %380 = vector.broadcast %379 : vector<1x16xf32> to vector<4x16xf32>
    %381 = arith.mulf %378, %380 : vector<4x16xf32>
    %382 = arith.addf %364, %381 : vector<4x16xf32>
    %c76 = arith.constant 76 : index
    %c0_204 = arith.constant 0 : index
    %383 = vector.load %arg6[%c76, %c0_204] : memref<128x16xf32, #tpu.memory_space<vmem>>, vector<1x16xf32>
    %384 = vector.broadcast %383 : vector<1x16xf32> to vector<4x16xf32>
    %385 = arith.mulf %378, %384 : vector<4x16xf32>
    %386 = arith.addf %368, %385 : vector<4x16xf32>
    %c84 = arith.constant 84 : index
    %c0_205 = arith.constant 0 : index
    %387 = vector.load %arg6[%c84, %c0_205] : memref<128x16xf32, #tpu.memory_space<vmem>>, vector<1x16xf32>
    %388 = vector.broadcast %387 : vector<1x16xf32> to vector<4x16xf32>
    %389 = arith.mulf %378, %388 : vector<4x16xf32>
    %390 = arith.addf %372, %389 : vector<4x16xf32>
    %c92 = arith.constant 92 : index
    %c0_206 = arith.constant 0 : index
    %391 = vector.load %arg6[%c92, %c0_206] : memref<128x16xf32, #tpu.memory_space<vmem>>, vector<1x16xf32>
    %392 = vector.broadcast %391 : vector<1x16xf32> to vector<4x16xf32>
    %393 = arith.mulf %378, %392 : vector<4x16xf32>
    %394 = arith.addf %376, %393 : vector<4x16xf32>
    %c0_207 = arith.constant 0 : index
    %c5_208 = arith.constant 5 : index
    %c4_209 = arith.constant 4 : index
    %c0_210 = arith.constant 0 : index
    %395 = vector.load %arg4[%c0_207, %c5_208, %c4_209, %c0_210] : memref<1x8x8x16xf32, #tpu.memory_space<vmem>>, vector<1x1x4x16xf32>
    %396 = vector.shape_cast %395 : vector<1x1x4x16xf32> to vector<4x16xf32>
    %c69 = arith.constant 69 : index
    %c0_211 = arith.constant 0 : index
    %397 = vector.load %arg6[%c69, %c0_211] : memref<128x16xf32, #tpu.memory_space<vmem>>, vector<1x16xf32>
    %398 = vector.broadcast %397 : vector<1x16xf32> to vector<4x16xf32>
    %399 = arith.mulf %396, %398 : vector<4x16xf32>
    %400 = arith.addf %382, %399 : vector<4x16xf32>
    %c77 = arith.constant 77 : index
    %c0_212 = arith.constant 0 : index
    %401 = vector.load %arg6[%c77, %c0_212] : memref<128x16xf32, #tpu.memory_space<vmem>>, vector<1x16xf32>
    %402 = vector.broadcast %401 : vector<1x16xf32> to vector<4x16xf32>
    %403 = arith.mulf %396, %402 : vector<4x16xf32>
    %404 = arith.addf %386, %403 : vector<4x16xf32>
    %c85 = arith.constant 85 : index
    %c0_213 = arith.constant 0 : index
    %405 = vector.load %arg6[%c85, %c0_213] : memref<128x16xf32, #tpu.memory_space<vmem>>, vector<1x16xf32>
    %406 = vector.broadcast %405 : vector<1x16xf32> to vector<4x16xf32>
    %407 = arith.mulf %396, %406 : vector<4x16xf32>
    %408 = arith.addf %390, %407 : vector<4x16xf32>
    %c93 = arith.constant 93 : index
    %c0_214 = arith.constant 0 : index
    %409 = vector.load %arg6[%c93, %c0_214] : memref<128x16xf32, #tpu.memory_space<vmem>>, vector<1x16xf32>
    %410 = vector.broadcast %409 : vector<1x16xf32> to vector<4x16xf32>
    %411 = arith.mulf %396, %410 : vector<4x16xf32>
    %412 = arith.addf %394, %411 : vector<4x16xf32>
    %c0_215 = arith.constant 0 : index
    %c6_216 = arith.constant 6 : index
    %c4_217 = arith.constant 4 : index
    %c0_218 = arith.constant 0 : index
    %413 = vector.load %arg4[%c0_215, %c6_216, %c4_217, %c0_218] : memref<1x8x8x16xf32, #tpu.memory_space<vmem>>, vector<1x1x4x16xf32>
    %414 = vector.shape_cast %413 : vector<1x1x4x16xf32> to vector<4x16xf32>
    %c70 = arith.constant 70 : index
    %c0_219 = arith.constant 0 : index
    %415 = vector.load %arg6[%c70, %c0_219] : memref<128x16xf32, #tpu.memory_space<vmem>>, vector<1x16xf32>
    %416 = vector.broadcast %415 : vector<1x16xf32> to vector<4x16xf32>
    %417 = arith.mulf %414, %416 : vector<4x16xf32>
    %418 = arith.addf %400, %417 : vector<4x16xf32>
    %c78 = arith.constant 78 : index
    %c0_220 = arith.constant 0 : index
    %419 = vector.load %arg6[%c78, %c0_220] : memref<128x16xf32, #tpu.memory_space<vmem>>, vector<1x16xf32>
    %420 = vector.broadcast %419 : vector<1x16xf32> to vector<4x16xf32>
    %421 = arith.mulf %414, %420 : vector<4x16xf32>
    %422 = arith.addf %404, %421 : vector<4x16xf32>
    %c86 = arith.constant 86 : index
    %c0_221 = arith.constant 0 : index
    %423 = vector.load %arg6[%c86, %c0_221] : memref<128x16xf32, #tpu.memory_space<vmem>>, vector<1x16xf32>
    %424 = vector.broadcast %423 : vector<1x16xf32> to vector<4x16xf32>
    %425 = arith.mulf %414, %424 : vector<4x16xf32>
    %426 = arith.addf %408, %425 : vector<4x16xf32>
    %c94 = arith.constant 94 : index
    %c0_222 = arith.constant 0 : index
    %427 = vector.load %arg6[%c94, %c0_222] : memref<128x16xf32, #tpu.memory_space<vmem>>, vector<1x16xf32>
    %428 = vector.broadcast %427 : vector<1x16xf32> to vector<4x16xf32>
    %429 = arith.mulf %414, %428 : vector<4x16xf32>
    %430 = arith.addf %412, %429 : vector<4x16xf32>
    %c0_223 = arith.constant 0 : index
    %c7_224 = arith.constant 7 : index
    %c4_225 = arith.constant 4 : index
    %c0_226 = arith.constant 0 : index
    %431 = vector.load %arg4[%c0_223, %c7_224, %c4_225, %c0_226] : memref<1x8x8x16xf32, #tpu.memory_space<vmem>>, vector<1x1x4x16xf32>
    %432 = vector.shape_cast %431 : vector<1x1x4x16xf32> to vector<4x16xf32>
    %c71 = arith.constant 71 : index
    %c0_227 = arith.constant 0 : index
    %433 = vector.load %arg6[%c71, %c0_227] : memref<128x16xf32, #tpu.memory_space<vmem>>, vector<1x16xf32>
    %434 = vector.broadcast %433 : vector<1x16xf32> to vector<4x16xf32>
    %435 = arith.mulf %432, %434 : vector<4x16xf32>
    %436 = arith.addf %418, %435 : vector<4x16xf32>
    %c79 = arith.constant 79 : index
    %c0_228 = arith.constant 0 : index
    %437 = vector.load %arg6[%c79, %c0_228] : memref<128x16xf32, #tpu.memory_space<vmem>>, vector<1x16xf32>
    %438 = vector.broadcast %437 : vector<1x16xf32> to vector<4x16xf32>
    %439 = arith.mulf %432, %438 : vector<4x16xf32>
    %440 = arith.addf %422, %439 : vector<4x16xf32>
    %c87 = arith.constant 87 : index
    %c0_229 = arith.constant 0 : index
    %441 = vector.load %arg6[%c87, %c0_229] : memref<128x16xf32, #tpu.memory_space<vmem>>, vector<1x16xf32>
    %442 = vector.broadcast %441 : vector<1x16xf32> to vector<4x16xf32>
    %443 = arith.mulf %432, %442 : vector<4x16xf32>
    %444 = arith.addf %426, %443 : vector<4x16xf32>
    %c95 = arith.constant 95 : index
    %c0_230 = arith.constant 0 : index
    %445 = vector.load %arg6[%c95, %c0_230] : memref<128x16xf32, #tpu.memory_space<vmem>>, vector<1x16xf32>
    %446 = vector.broadcast %445 : vector<1x16xf32> to vector<4x16xf32>
    %447 = arith.mulf %432, %446 : vector<4x16xf32>
    %448 = arith.addf %430, %447 : vector<4x16xf32>
    %c0_231 = arith.constant 0 : index
    %c0_232 = arith.constant 0 : index
    %c4_233 = arith.constant 4 : index
    %c0_234 = arith.constant 0 : index
    %449 = vector.load %arg5[%c0_231, %c0_232, %c4_233, %c0_234] : memref<1x8x8x16xf32, #tpu.memory_space<vmem>>, vector<1x1x4x16xf32>
    %450 = vector.shape_cast %449 : vector<1x1x4x16xf32> to vector<4x16xf32>
    %451 = vector.shape_cast %436 : vector<4x16xf32> to vector<1x1x4x16xf32>
    tpu.vector_store %arg5[%c0_231, %c0_232, %c4_233, %c0_234], %451 {strides = array<i32>} : memref<1x8x8x16xf32, #tpu.memory_space<vmem>>, vector<1x1x4x16xf32>,
    %c0_235 = arith.constant 0 : index
    %c1_236 = arith.constant 1 : index
    %c4_237 = arith.constant 4 : index
    %c0_238 = arith.constant 0 : index
    %452 = vector.load %arg5[%c0_235, %c1_236, %c4_237, %c0_238] : memref<1x8x8x16xf32, #tpu.memory_space<vmem>>, vector<1x1x4x16xf32>
    %453 = vector.shape_cast %452 : vector<1x1x4x16xf32> to vector<4x16xf32>
    %454 = vector.shape_cast %440 : vector<4x16xf32> to vector<1x1x4x16xf32>
    tpu.vector_store %arg5[%c0_235, %c1_236, %c4_237, %c0_238], %454 {strides = array<i32>} : memref<1x8x8x16xf32, #tpu.memory_space<vmem>>, vector<1x1x4x16xf32>,
    %c0_239 = arith.constant 0 : index
    %c2_240 = arith.constant 2 : index
    %c4_241 = arith.constant 4 : index
    %c0_242 = arith.constant 0 : index
    %455 = vector.load %arg5[%c0_239, %c2_240, %c4_241, %c0_242] : memref<1x8x8x16xf32, #tpu.memory_space<vmem>>, vector<1x1x4x16xf32>
    %456 = vector.shape_cast %455 : vector<1x1x4x16xf32> to vector<4x16xf32>
    %457 = vector.shape_cast %444 : vector<4x16xf32> to vector<1x1x4x16xf32>
    tpu.vector_store %arg5[%c0_239, %c2_240, %c4_241, %c0_242], %457 {strides = array<i32>} : memref<1x8x8x16xf32, #tpu.memory_space<vmem>>, vector<1x1x4x16xf32>,
    %c0_243 = arith.constant 0 : index
    %c3_244 = arith.constant 3 : index
    %c4_245 = arith.constant 4 : index
    %c0_246 = arith.constant 0 : index
    %458 = vector.load %arg5[%c0_243, %c3_244, %c4_245, %c0_246] : memref<1x8x8x16xf32, #tpu.memory_space<vmem>>, vector<1x1x4x16xf32>
    %459 = vector.shape_cast %458 : vector<1x1x4x16xf32> to vector<4x16xf32>
    %460 = vector.shape_cast %448 : vector<4x16xf32> to vector<1x1x4x16xf32>
    tpu.vector_store %arg5[%c0_243, %c3_244, %c4_245, %c0_246], %460 {strides = array<i32>} : memref<1x8x8x16xf32, #tpu.memory_space<vmem>>, vector<1x1x4x16xf32>,
    %c0_247 = arith.constant 0 : index
    %c0_248 = arith.constant 0 : index
    %c4_249 = arith.constant 4 : index
    %c0_250 = arith.constant 0 : index
    %461 = vector.load %arg4[%c0_247, %c0_248, %c4_249, %c0_250] : memref<1x8x8x16xf32, #tpu.memory_space<vmem>>, vector<1x1x4x16xf32>
    %462 = vector.shape_cast %461 : vector<1x1x4x16xf32> to vector<4x16xf32>
    %c96 = arith.constant 96 : index
    %c0_251 = arith.constant 0 : index
    %463 = vector.load %arg6[%c96, %c0_251] : memref<128x16xf32, #tpu.memory_space<vmem>>, vector<1x16xf32>
    %464 = vector.broadcast %463 : vector<1x16xf32> to vector<4x16xf32>
    %465 = arith.mulf %462, %464 : vector<4x16xf32>
    %c104 = arith.constant 104 : index
    %c0_252 = arith.constant 0 : index
    %466 = vector.load %arg6[%c104, %c0_252] : memref<128x16xf32, #tpu.memory_space<vmem>>, vector<1x16xf32>
    %467 = vector.broadcast %466 : vector<1x16xf32> to vector<4x16xf32>
    %468 = arith.mulf %462, %467 : vector<4x16xf32>
    %c112 = arith.constant 112 : index
    %c0_253 = arith.constant 0 : index
    %469 = vector.load %arg6[%c112, %c0_253] : memref<128x16xf32, #tpu.memory_space<vmem>>, vector<1x16xf32>
    %470 = vector.broadcast %469 : vector<1x16xf32> to vector<4x16xf32>
    %471 = arith.mulf %462, %470 : vector<4x16xf32>
    %c120 = arith.constant 120 : index
    %c0_254 = arith.constant 0 : index
    %472 = vector.load %arg6[%c120, %c0_254] : memref<128x16xf32, #tpu.memory_space<vmem>>, vector<1x16xf32>
    %473 = vector.broadcast %472 : vector<1x16xf32> to vector<4x16xf32>
    %474 = arith.mulf %462, %473 : vector<4x16xf32>
    %c0_255 = arith.constant 0 : index
    %c1_256 = arith.constant 1 : index
    %c4_257 = arith.constant 4 : index
    %c0_258 = arith.constant 0 : index
    %475 = vector.load %arg4[%c0_255, %c1_256, %c4_257, %c0_258] : memref<1x8x8x16xf32, #tpu.memory_space<vmem>>, vector<1x1x4x16xf32>
    %476 = vector.shape_cast %475 : vector<1x1x4x16xf32> to vector<4x16xf32>
    %c97 = arith.constant 97 : index
    %c0_259 = arith.constant 0 : index
    %477 = vector.load %arg6[%c97, %c0_259] : memref<128x16xf32, #tpu.memory_space<vmem>>, vector<1x16xf32>
    %478 = vector.broadcast %477 : vector<1x16xf32> to vector<4x16xf32>
    %479 = arith.mulf %476, %478 : vector<4x16xf32>
    %480 = arith.addf %465, %479 : vector<4x16xf32>
    %c105 = arith.constant 105 : index
    %c0_260 = arith.constant 0 : index
    %481 = vector.load %arg6[%c105, %c0_260] : memref<128x16xf32, #tpu.memory_space<vmem>>, vector<1x16xf32>
    %482 = vector.broadcast %481 : vector<1x16xf32> to vector<4x16xf32>
    %483 = arith.mulf %476, %482 : vector<4x16xf32>
    %484 = arith.addf %468, %483 : vector<4x16xf32>
    %c113 = arith.constant 113 : index
    %c0_261 = arith.constant 0 : index
    %485 = vector.load %arg6[%c113, %c0_261] : memref<128x16xf32, #tpu.memory_space<vmem>>, vector<1x16xf32>
    %486 = vector.broadcast %485 : vector<1x16xf32> to vector<4x16xf32>
    %487 = arith.mulf %476, %486 : vector<4x16xf32>
    %488 = arith.addf %471, %487 : vector<4x16xf32>
    %c121 = arith.constant 121 : index
    %c0_262 = arith.constant 0 : index
    %489 = vector.load %arg6[%c121, %c0_262] : memref<128x16xf32, #tpu.memory_space<vmem>>, vector<1x16xf32>
    %490 = vector.broadcast %489 : vector<1x16xf32> to vector<4x16xf32>
    %491 = arith.mulf %476, %490 : vector<4x16xf32>
    %492 = arith.addf %474, %491 : vector<4x16xf32>
    %c0_263 = arith.constant 0 : index
    %c2_264 = arith.constant 2 : index
    %c4_265 = arith.constant 4 : index
    %c0_266 = arith.constant 0 : index
    %493 = vector.load %arg4[%c0_263, %c2_264, %c4_265, %c0_266] : memref<1x8x8x16xf32, #tpu.memory_space<vmem>>, vector<1x1x4x16xf32>
    %494 = vector.shape_cast %493 : vector<1x1x4x16xf32> to vector<4x16xf32>
    %c98 = arith.constant 98 : index
    %c0_267 = arith.constant 0 : index
    %495 = vector.load %arg6[%c98, %c0_267] : memref<128x16xf32, #tpu.memory_space<vmem>>, vector<1x16xf32>
    %496 = vector.broadcast %495 : vector<1x16xf32> to vector<4x16xf32>
    %497 = arith.mulf %494, %496 : vector<4x16xf32>
    %498 = arith.addf %480, %497 : vector<4x16xf32>
    %c106 = arith.constant 106 : index
    %c0_268 = arith.constant 0 : index
    %499 = vector.load %arg6[%c106, %c0_268] : memref<128x16xf32, #tpu.memory_space<vmem>>, vector<1x16xf32>
    %500 = vector.broadcast %499 : vector<1x16xf32> to vector<4x16xf32>
    %501 = arith.mulf %494, %500 : vector<4x16xf32>
    %502 = arith.addf %484, %501 : vector<4x16xf32>
    %c114 = arith.constant 114 : index
    %c0_269 = arith.constant 0 : index
    %503 = vector.load %arg6[%c114, %c0_269] : memref<128x16xf32, #tpu.memory_space<vmem>>, vector<1x16xf32>
    %504 = vector.broadcast %503 : vector<1x16xf32> to vector<4x16xf32>
    %505 = arith.mulf %494, %504 : vector<4x16xf32>
    %506 = arith.addf %488, %505 : vector<4x16xf32>
    %c122 = arith.constant 122 : index
    %c0_270 = arith.constant 0 : index
    %507 = vector.load %arg6[%c122, %c0_270] : memref<128x16xf32, #tpu.memory_space<vmem>>, vector<1x16xf32>
    %508 = vector.broadcast %507 : vector<1x16xf32> to vector<4x16xf32>
    %509 = arith.mulf %494, %508 : vector<4x16xf32>
    %510 = arith.addf %492, %509 : vector<4x16xf32>
    %c0_271 = arith.constant 0 : index
    %c3_272 = arith.constant 3 : index
    %c4_273 = arith.constant 4 : index
    %c0_274 = arith.constant 0 : index
    %511 = vector.load %arg4[%c0_271, %c3_272, %c4_273, %c0_274] : memref<1x8x8x16xf32, #tpu.memory_space<vmem>>, vector<1x1x4x16xf32>
    %512 = vector.shape_cast %511 : vector<1x1x4x16xf32> to vector<4x16xf32>
    %c99 = arith.constant 99 : index
    %c0_275 = arith.constant 0 : index
    %513 = vector.load %arg6[%c99, %c0_275] : memref<128x16xf32, #tpu.memory_space<vmem>>, vector<1x16xf32>
    %514 = vector.broadcast %513 : vector<1x16xf32> to vector<4x16xf32>
    %515 = arith.mulf %512, %514 : vector<4x16xf32>
    %516 = arith.addf %498, %515 : vector<4x16xf32>
    %c107 = arith.constant 107 : index
    %c0_276 = arith.constant 0 : index
    %517 = vector.load %arg6[%c107, %c0_276] : memref<128x16xf32, #tpu.memory_space<vmem>>, vector<1x16xf32>
    %518 = vector.broadcast %517 : vector<1x16xf32> to vector<4x16xf32>
    %519 = arith.mulf %512, %518 : vector<4x16xf32>
    %520 = arith.addf %502, %519 : vector<4x16xf32>
    %c115 = arith.constant 115 : index
    %c0_277 = arith.constant 0 : index
    %521 = vector.load %arg6[%c115, %c0_277] : memref<128x16xf32, #tpu.memory_space<vmem>>, vector<1x16xf32>
    %522 = vector.broadcast %521 : vector<1x16xf32> to vector<4x16xf32>
    %523 = arith.mulf %512, %522 : vector<4x16xf32>
    %524 = arith.addf %506, %523 : vector<4x16xf32>
    %c123 = arith.constant 123 : index
    %c0_278 = arith.constant 0 : index
    %525 = vector.load %arg6[%c123, %c0_278] : memref<128x16xf32, #tpu.memory_space<vmem>>, vector<1x16xf32>
    %526 = vector.broadcast %525 : vector<1x16xf32> to vector<4x16xf32>
    %527 = arith.mulf %512, %526 : vector<4x16xf32>
    %528 = arith.addf %510, %527 : vector<4x16xf32>
    %c0_279 = arith.constant 0 : index
    %c4_280 = arith.constant 4 : index
    %c4_281 = arith.constant 4 : index
    %c0_282 = arith.constant 0 : index
    %529 = vector.load %arg4[%c0_279, %c4_280, %c4_281, %c0_282] : memref<1x8x8x16xf32, #tpu.memory_space<vmem>>, vector<1x1x4x16xf32>
    %530 = vector.shape_cast %529 : vector<1x1x4x16xf32> to vector<4x16xf32>
    %c100 = arith.constant 100 : index
    %c0_283 = arith.constant 0 : index
    %531 = vector.load %arg6[%c100, %c0_283] : memref<128x16xf32, #tpu.memory_space<vmem>>, vector<1x16xf32>
    %532 = vector.broadcast %531 : vector<1x16xf32> to vector<4x16xf32>
    %533 = arith.mulf %530, %532 : vector<4x16xf32>
    %534 = arith.addf %516, %533 : vector<4x16xf32>
    %c108 = arith.constant 108 : index
    %c0_284 = arith.constant 0 : index
    %535 = vector.load %arg6[%c108, %c0_284] : memref<128x16xf32, #tpu.memory_space<vmem>>, vector<1x16xf32>
    %536 = vector.broadcast %535 : vector<1x16xf32> to vector<4x16xf32>
    %537 = arith.mulf %530, %536 : vector<4x16xf32>
    %538 = arith.addf %520, %537 : vector<4x16xf32>
    %c116 = arith.constant 116 : index
    %c0_285 = arith.constant 0 : index
    %539 = vector.load %arg6[%c116, %c0_285] : memref<128x16xf32, #tpu.memory_space<vmem>>, vector<1x16xf32>
    %540 = vector.broadcast %539 : vector<1x16xf32> to vector<4x16xf32>
    %541 = arith.mulf %530, %540 : vector<4x16xf32>
    %542 = arith.addf %524, %541 : vector<4x16xf32>
    %c124 = arith.constant 124 : index
    %c0_286 = arith.constant 0 : index
    %543 = vector.load %arg6[%c124, %c0_286] : memref<128x16xf32, #tpu.memory_space<vmem>>, vector<1x16xf32>
    %544 = vector.broadcast %543 : vector<1x16xf32> to vector<4x16xf32>
    %545 = arith.mulf %530, %544 : vector<4x16xf32>
    %546 = arith.addf %528, %545 : vector<4x16xf32>
    %c0_287 = arith.constant 0 : index
    %c5_288 = arith.constant 5 : index
    %c4_289 = arith.constant 4 : index
    %c0_290 = arith.constant 0 : index
    %547 = vector.load %arg4[%c0_287, %c5_288, %c4_289, %c0_290] : memref<1x8x8x16xf32, #tpu.memory_space<vmem>>, vector<1x1x4x16xf32>
    %548 = vector.shape_cast %547 : vector<1x1x4x16xf32> to vector<4x16xf32>
    %c101 = arith.constant 101 : index
    %c0_291 = arith.constant 0 : index
    %549 = vector.load %arg6[%c101, %c0_291] : memref<128x16xf32, #tpu.memory_space<vmem>>, vector<1x16xf32>
    %550 = vector.broadcast %549 : vector<1x16xf32> to vector<4x16xf32>
    %551 = arith.mulf %548, %550 : vector<4x16xf32>
    %552 = arith.addf %534, %551 : vector<4x16xf32>
    %c109 = arith.constant 109 : index
    %c0_292 = arith.constant 0 : index
    %553 = vector.load %arg6[%c109, %c0_292] : memref<128x16xf32, #tpu.memory_space<vmem>>, vector<1x16xf32>
    %554 = vector.broadcast %553 : vector<1x16xf32> to vector<4x16xf32>
    %555 = arith.mulf %548, %554 : vector<4x16xf32>
    %556 = arith.addf %538, %555 : vector<4x16xf32>
    %c117 = arith.constant 117 : index
    %c0_293 = arith.constant 0 : index
    %557 = vector.load %arg6[%c117, %c0_293] : memref<128x16xf32, #tpu.memory_space<vmem>>, vector<1x16xf32>
    %558 = vector.broadcast %557 : vector<1x16xf32> to vector<4x16xf32>
    %559 = arith.mulf %548, %558 : vector<4x16xf32>
    %560 = arith.addf %542, %559 : vector<4x16xf32>
    %c125 = arith.constant 125 : index
    %c0_294 = arith.constant 0 : index
    %561 = vector.load %arg6[%c125, %c0_294] : memref<128x16xf32, #tpu.memory_space<vmem>>, vector<1x16xf32>
    %562 = vector.broadcast %561 : vector<1x16xf32> to vector<4x16xf32>
    %563 = arith.mulf %548, %562 : vector<4x16xf32>
    %564 = arith.addf %546, %563 : vector<4x16xf32>
    %c0_295 = arith.constant 0 : index
    %c6_296 = arith.constant 6 : index
    %c4_297 = arith.constant 4 : index
    %c0_298 = arith.constant 0 : index
    %565 = vector.load %arg4[%c0_295, %c6_296, %c4_297, %c0_298] : memref<1x8x8x16xf32, #tpu.memory_space<vmem>>, vector<1x1x4x16xf32>
    %566 = vector.shape_cast %565 : vector<1x1x4x16xf32> to vector<4x16xf32>
    %c102 = arith.constant 102 : index
    %c0_299 = arith.constant 0 : index
    %567 = vector.load %arg6[%c102, %c0_299] : memref<128x16xf32, #tpu.memory_space<vmem>>, vector<1x16xf32>
    %568 = vector.broadcast %567 : vector<1x16xf32> to vector<4x16xf32>
    %569 = arith.mulf %566, %568 : vector<4x16xf32>
    %570 = arith.addf %552, %569 : vector<4x16xf32>
    %c110 = arith.constant 110 : index
    %c0_300 = arith.constant 0 : index
    %571 = vector.load %arg6[%c110, %c0_300] : memref<128x16xf32, #tpu.memory_space<vmem>>, vector<1x16xf32>
    %572 = vector.broadcast %571 : vector<1x16xf32> to vector<4x16xf32>
    %573 = arith.mulf %566, %572 : vector<4x16xf32>
    %574 = arith.addf %556, %573 : vector<4x16xf32>
    %c118 = arith.constant 118 : index
    %c0_301 = arith.constant 0 : index
    %575 = vector.load %arg6[%c118, %c0_301] : memref<128x16xf32, #tpu.memory_space<vmem>>, vector<1x16xf32>
    %576 = vector.broadcast %575 : vector<1x16xf32> to vector<4x16xf32>
    %577 = arith.mulf %566, %576 : vector<4x16xf32>
    %578 = arith.addf %560, %577 : vector<4x16xf32>
    %c126 = arith.constant 126 : index
    %c0_302 = arith.constant 0 : index
    %579 = vector.load %arg6[%c126, %c0_302] : memref<128x16xf32, #tpu.memory_space<vmem>>, vector<1x16xf32>
    %580 = vector.broadcast %579 : vector<1x16xf32> to vector<4x16xf32>
    %581 = arith.mulf %566, %580 : vector<4x16xf32>
    %582 = arith.addf %564, %581 : vector<4x16xf32>
    %c0_303 = arith.constant 0 : index
    %c7_304 = arith.constant 7 : index
    %c4_305 = arith.constant 4 : index
    %c0_306 = arith.constant 0 : index
    %583 = vector.load %arg4[%c0_303, %c7_304, %c4_305, %c0_306] : memref<1x8x8x16xf32, #tpu.memory_space<vmem>>, vector<1x1x4x16xf32>
    %584 = vector.shape_cast %583 : vector<1x1x4x16xf32> to vector<4x16xf32>
    %c103 = arith.constant 103 : index
    %c0_307 = arith.constant 0 : index
    %585 = vector.load %arg6[%c103, %c0_307] : memref<128x16xf32, #tpu.memory_space<vmem>>, vector<1x16xf32>
    %586 = vector.broadcast %585 : vector<1x16xf32> to vector<4x16xf32>
    %587 = arith.mulf %584, %586 : vector<4x16xf32>
    %588 = arith.addf %570, %587 : vector<4x16xf32>
    %c111 = arith.constant 111 : index
    %c0_308 = arith.constant 0 : index
    %589 = vector.load %arg6[%c111, %c0_308] : memref<128x16xf32, #tpu.memory_space<vmem>>, vector<1x16xf32>
    %590 = vector.broadcast %589 : vector<1x16xf32> to vector<4x16xf32>
    %591 = arith.mulf %584, %590 : vector<4x16xf32>
    %592 = arith.addf %574, %591 : vector<4x16xf32>
    %c119 = arith.constant 119 : index
    %c0_309 = arith.constant 0 : index
    %593 = vector.load %arg6[%c119, %c0_309] : memref<128x16xf32, #tpu.memory_space<vmem>>, vector<1x16xf32>
    %594 = vector.broadcast %593 : vector<1x16xf32> to vector<4x16xf32>
    %595 = arith.mulf %584, %594 : vector<4x16xf32>
    %596 = arith.addf %578, %595 : vector<4x16xf32>
    %c127 = arith.constant 127 : index
    %c0_310 = arith.constant 0 : index
    %597 = vector.load %arg6[%c127, %c0_310] : memref<128x16xf32, #tpu.memory_space<vmem>>, vector<1x16xf32>
    %598 = vector.broadcast %597 : vector<1x16xf32> to vector<4x16xf32>
    %599 = arith.mulf %584, %598 : vector<4x16xf32>
    %600 = arith.addf %582, %599 : vector<4x16xf32>
    %c0_311 = arith.constant 0 : index
    %c4_312 = arith.constant 4 : index
    %c4_313 = arith.constant 4 : index
    %c0_314 = arith.constant 0 : index
    %601 = vector.load %arg5[%c0_311, %c4_312, %c4_313, %c0_314] : memref<1x8x8x16xf32, #tpu.memory_space<vmem>>, vector<1x1x4x16xf32>
    %602 = vector.shape_cast %601 : vector<1x1x4x16xf32> to vector<4x16xf32>
    %603 = vector.shape_cast %588 : vector<4x16xf32> to vector<1x1x4x16xf32>
    tpu.vector_store %arg5[%c0_311, %c4_312, %c4_313, %c0_314], %603 {strides = array<i32>} : memref<1x8x8x16xf32, #tpu.memory_space<vmem>>, vector<1x1x4x16xf32>,
    %c0_315 = arith.constant 0 : index
    %c5_316 = arith.constant 5 : index
    %c4_317 = arith.constant 4 : index
    %c0_318 = arith.constant 0 : index
    %604 = vector.load %arg5[%c0_315, %c5_316, %c4_317, %c0_318] : memref<1x8x8x16xf32, #tpu.memory_space<vmem>>, vector<1x1x4x16xf32>
    %605 = vector.shape_cast %604 : vector<1x1x4x16xf32> to vector<4x16xf32>
    %606 = vector.shape_cast %592 : vector<4x16xf32> to vector<1x1x4x16xf32>
    tpu.vector_store %arg5[%c0_315, %c5_316, %c4_317, %c0_318], %606 {strides = array<i32>} : memref<1x8x8x16xf32, #tpu.memory_space<vmem>>, vector<1x1x4x16xf32>,
    %c0_319 = arith.constant 0 : index
    %c6_320 = arith.constant 6 : index
    %c4_321 = arith.constant 4 : index
    %c0_322 = arith.constant 0 : index
    %607 = vector.load %arg5[%c0_319, %c6_320, %c4_321, %c0_322] : memref<1x8x8x16xf32, #tpu.memory_space<vmem>>, vector<1x1x4x16xf32>
    %608 = vector.shape_cast %607 : vector<1x1x4x16xf32> to vector<4x16xf32>
    %609 = vector.shape_cast %596 : vector<4x16xf32> to vector<1x1x4x16xf32>
    tpu.vector_store %arg5[%c0_319, %c6_320, %c4_321, %c0_322], %609 {strides = array<i32>} : memref<1x8x8x16xf32, #tpu.memory_space<vmem>>, vector<1x1x4x16xf32>,
    %c0_323 = arith.constant 0 : index
    %c7_324 = arith.constant 7 : index
    %c4_325 = arith.constant 4 : index
    %c0_326 = arith.constant 0 : index
    %610 = vector.load %arg5[%c0_323, %c7_324, %c4_325, %c0_326] : memref<1x8x8x16xf32, #tpu.memory_space<vmem>>, vector<1x1x4x16xf32>
    %611 = vector.shape_cast %610 : vector<1x1x4x16xf32> to vector<4x16xf32>
    %612 = vector.shape_cast %600 : vector<4x16xf32> to vector<1x1x4x16xf32>
    tpu.vector_store %arg5[%c0_323, %c7_324, %c4_325, %c0_326], %612 {strides = array<i32>} : memref<1x8x8x16xf32, #tpu.memory_space<vmem>>, vector<1x1x4x16xf32>,
    return
  }
  func.func @transform_0(%arg0: i32, %arg1: i32) -> (i32, i32, i32) {
    %c0_i32 = arith.constant 0 : i32
    %c0_i32_0 = arith.constant 0 : i32
    return %arg0, %arg1, %c0_i32 : i32, i32, i32
  }
  func.func @transform_1(%arg0: i32, %arg1: i32) -> (i32, i32) {
    %c0_i32 = arith.constant 0 : i32
    %c0_i32_0 = arith.constant 0 : i32
    %c0_i32_1 = arith.constant 0 : i32
    return %c0_i32, %c0_i32_0 : i32, i32
  }
  func.func @transform_2(%arg0: i32, %arg1: i32) -> (i32, i32, i32, i32) {
    %c0_i32 = arith.constant 0 : i32
    %c0_i32_0 = arith.constant 0 : i32
    %c0_i32_1 = arith.constant 0 : i32
    return %arg0, %c0_i32, %arg1, %c0_i32_0 : i32, i32, i32, i32
  }
  func.func @transform_3(%arg0: i32, %arg1: i32) -> (i32, i32, i32, i32) {
    %c0_i32 = arith.constant 0 : i32
    %c0_i32_0 = arith.constant 0 : i32
    %c0_i32_1 = arith.constant 0 : i32
    return %arg0, %c0_i32, %arg1, %c0_i32_0 : i32, i32, i32, i32
  }
}

</mosaic_0001>

<bundles_post_ra>
// kernel: tpu_custom_call.1
= control target key start
LH: loop header
LB: loop body
LE: loop exit
PB: predicated region body
PF: predicated region fallthrough
CT: control target
= control target key end

     0   :  { %8 = vsyncpa [#allocation5], 0  ;;  %s1955_s0 = inlined_call_operand.vmem [shape: f32[2,256,4], index: 0, kind: input, shape index: {}]   ;;  %s1956_s1 = inlined_call_operand.vmem [shape: f32[4,16], index: 1, kind: input, shape index: {}]   ;;  %s1957_s2 = inlined_call_operand.vmem [shape: f32[2,8,16,16], index: 2, kind: input, shape index: {}]   ;;  %s1958_s3 = inlined_call_operand.hbm [shape: f32[2,8,16,16], index: 3, kind: output, shape index: {}]  }
   0x1   :  { %10 = vsyncpa [#allocation5 + $0x1], 0  ;;  %s1516_s12 = smov 0   ;;  %s1518_s13 = smov 0  }
   0x2   :  { %s1520_s14 = smov 0   ;;  %s1522_s15 = smov 0  }
   0x3   :  { %s1524_s16 = smov 0   ;;  %s1526_s17 = smov 0  }
   0x4   :  { %s1528_s18 = smov 0   ;;  %s1530_s19 = smov 0  }
   0x5 LB: > { %s1115_s20 = sadd.s32 4294967295, %s1491_s19   ;;  %s1116_s21 = sadd.s32 4294967294, %s1491_s19   ;;  %s1491_s19 = sphi %s1530_s19, %s16_s19   ;;  %s1487_s18 = sphi %s1528_s18, %s1968_s18   ;;  %s1483_s17 = sphi %s1526_s17, %s1967_s17   ;;  %s1479_s16 = sphi %s1524_s16, %s1966_s16   ;;  %s1475_s15 = sphi %s1522_s15, %s1965_s15   ;;  %s1471_s14 = sphi %s1520_s14, %s1964_s14   ;;  %s1467_s13 = sphi %s1518_s13, %s1963_s13   ;;  %s1463_s12 = sphi %s1516_s12, %s1962_s12  }
   0x6   : > { %s25_s22 = sadd.s32 1, %s1483_s17  ;;  %s28_s23 = sadd.s32 1, %s1487_s18 }
   0x7   : > { %p26_p0 = scmp.ge.s32.totalorder %s25_s22, 2  ;;  %p93_p1 = scmp.ne.s32.totalorder %s1471_s14, %s1467_s13 }
   0x8   : > { %p94_p2 = scmp.eq.s32.totalorder %s1491_s19, 0  ;;  %p125_p5 = scmp.eq.s32.totalorder %s1115_s20, 3 }
   0x9   : > { %s1970_s22 = smov (%p26_p0, %s25_s22), 0  ;;  %s1972_s23 = smov (!%p26_p0, %s28_s23), %s1487_s18 }
   0xa   : > { %s82_s24 = ssub.s32 %s1483_s17, %s1970_s22  ;;  %p1568_p3 = por %p94_p2, %p93_p1 }
   0xb   : > { %p30_p4 = scmp.ge.s32.totalorder %s1972_s23, 2  ;;  %p130_p6 = scmp.ne.s32.totalorder %s1467_s13, %s1463_s12 }
   0xc   : > { %p131_p7 = scmp.eq.s32.totalorder %s1116_s21, 3  ;;  %p1576_p8 = por %p125_p5, %p93_p1 }
   0xd   : > { %s1974_s23 = smov (%p30_p4, %s1972_s23), 0  ;;  %s86_s30 = sadd.s32 1, %s1471_s14 }
   0xe   : > { %p1580_p9 = por %p131_p7, %p130_p6  ;;  %s81_s28 = ssub.s32 %s1487_s18, %s1974_s23 }
   0xf   : > { %s83_s29 = sor.u32 %s82_s24, %s81_s28  ;;  %p1118_p11 = scmp.ge.s32.totalorder %s1491_s19, 4 }
  0x10   : > { %p84_p10 = scmp.eq.s32.totalorder %s83_s29, 0 }
  0x11   : > { %150 = sbr.rel (%p1118_p11) target bundleno = 36 (0x24), region = 20 }
  0x12   : > { %s1588_s4 = scalar_select %p84_p10, %s1471_s14, %s86_s30  }
  0x16   : > { %166 = sbr.rel (!%p1568_p3) target bundleno = 36 (0x24), region = 28  ;;  %s168_s5 = sand.u32 (%p1568_p3), 1, %s1471_s14  }
  0x17   : > { %s1120_s6 = sshll.u32 (%p1568_p3), %s1487_s18, 4  ;;  %s1119_s7 = sshll.u32 (%p1568_p3), %s168_s5, 6 }
  0x18   : > { %s172_s8 = sadd.s32 (%p1568_p3), %s1483_s17, %s1120_s6  ;;  %s170_s21 = scalar_lea.vmem (%p1568_p3), [#allocation3], %s1119_s7 }
  0x19   : > { %s1121_s9 = sshll.u32 (%p1568_p3), %s172_s8, 3 }
  0x1a   : > { %s174_s20 = scalar_lea.vmem (%p1568_p3), %s1957_s2, %s1121_s9 }
  0x1b   : > { %v217_v0 = vld [vmem:[%s174_s20] sm:$0xff]  ;;  %v219_v1 = vld [vmem:[%s174_s20 + $0x10] sm:$0xff] }
  0x1c   : > { %v221_v2 = vld [vmem:[%s174_s20 + $0x20] sm:$0xff]  ;;  %218 = vst [vmem:[%s170_s21] sm:$0xff] %v217_v0  ;;  %v223_v3 = vld [vmem:[%s174_s20 + $0x30] sm:$0xff] }
  0x1d   : > { %220 = vst [vmem:[%s170_s21 + $0x8] sm:$0xff] %v219_v1  ;;  %v225_v4 = vld [vmem:[%s174_s20 + $0x40] sm:$0xff]  ;;  %v227_v5 = vld [vmem:[%s174_s20 + $0x50] sm:$0xff] }
  0x1e   : > { %222 = vst [vmem:[%s170_s21 + $0x10] sm:$0xff] %v221_v2  ;;  %v229_v6 = vld [vmem:[%s174_s20 + $0x60] sm:$0xff]  ;;  %v231_v7 = vld [vmem:[%s174_s20 + $0x70] sm:$0xff] }
  0x1f   : > { %224 = vst [vmem:[%s170_s21 + $0x18] sm:$0xff] %v223_v3 }
  0x20   : > { %226 = vst [vmem:[%s170_s21 + $0x20] sm:$0xff] %v225_v4 }
  0x21   : > { %228 = vst [vmem:[%s170_s21 + $0x28] sm:$0xff] %v227_v5 }
  0x22   : > { %230 = vst [vmem:[%s170_s21 + $0x30] sm:$0xff] %v229_v6 }
  0x23   : > { %232 = vst [vmem:[%s170_s21 + $0x38] sm:$0xff] %v231_v7 }
  0x24 PF: > { %p1122_p12 = scmp.ge.s32.totalorder %s1491_s19, 1  ;;  %p237_p13 = scmp.lt.s32.totalorder %s1491_s19, 5 }
  0x26   : > { %p238_p0 = pnand %p1122_p12, %p237_p13 }
  0x27   : > { %s1125_s28 = sshll.u32 (!%p238_p0), %s1475_s15, 4  ;;  %p277_p1 = scmp.lt.s32.totalorder (!%p238_p0), %s1479_s16, 1 }
  0x28   : > { %241 = sbr.rel (%p238_p0) target bundleno = 275 (0x113), region = 66  ;;  %p279_p2 = scmp.lt.s32.totalorder (!%p238_p0), %s1125_s28, 31 }
  0x29   : > { %s244_s10 = sand.u32 (!%p238_p0), 1, %s1467_s13   ;;  %s1188_s24 = sshll.u32 (!%p238_p0), %s1479_s16, 4 }
  0x2a   : > { %s1629_s11 = sshll.u32 (!%p238_p0), %s244_s10, 6  ;;  %s1008_s25 = sadd.s32 (!%p238_p0), %s1475_s15, %s1188_s24 }
  0x2b   : > { %s1634_s20 = scalar_lea.vmem (!%p238_p0), [#allocation3], %s1629_s11  ;;  %s1716_s21 = scalar_lea.vmem (!%p238_p0), [#allocation4], %s1629_s11 }
  0x2d   : > { %v302_v8 = vld [vmem:[%s1956_s1] sm:$0xf]  ;;  %vm352_vm0 = vcmask 1043456   ;;  %s278_s29 = scalar_select %p277_p1, %s1479_s16, 1  ;;  %vm303_vm1 = vcmask 31744   ;;  %vm421_vm2 = vcmask 130048  }
  0x2e   : > { %1128 = vmatpush.msk.msra.mxu0 %vm352_vm0, %v302_v8  ;;  %1192 = vmatpush.msk.msra.mxu1 %vm352_vm0, %v302_v8  ;;  %s1976_s28 = smov (!%p279_p2, %s1125_s28), 31  ;;  %v1637_v27 = vld [vmem:[%s1634_s20] sm:$0xf]  ;;  %v1640_v28 = vld [vmem:[%s1634_s20 + $0x8] sm:$0xf]  ;;  %vm577_vm3 = vcmask 125952  }
  0x2f   : > { %1193 = vmatpush.msk.msra.mxu2 %vm352_vm0, %v302_v8  ;;  %1194 = vmatpush.msk.msra.mxu3 %vm352_vm0, %v302_v8  ;;  %s1126_s30 = sshll.u32 %s278_s29, 5  ;;  %v1643_v29 = vld [vmem:[%s1634_s20 + $0x10] sm:$0xf]  ;;  %v1646_v31 = vld [vmem:[%s1634_s20 + $0x18] sm:$0xf]  ;;  %s1189_s16 = sshll.u32 %s1008_s25, 3 }
  0x30   : > { %s282_s5 = sadd.s32 %s1126_s30, %s1976_s28  ;;  %v1650_v37 = vld [vmem:[%s1634_s20] sm:$0xf]  ;;  %v1658_v43 = vld [vmem:[%s1634_s20 + $0x8] sm:$0xf]  ;;  %v1661_v45 = vld [vmem:[%s1634_s20 + $0x10] sm:$0xf]  ;;  %s1010_s15 = scalar_lea.hbm %s1958_s3, %s1189_s16 }
  0x31   : > { %s1127_s6 = sshll.u32 %s282_s5, 3  ;;  %v1655_v41 = vld [vmem:[%s1634_s20 + $0x20] sm:$0xf]  ;;  %v1665_v50 = vld [vmem:[%s1634_s20 + $0x18] sm:$0xf]  ;;  %s1011_s30 = sshll.u32 %s1716_s21, 4  ;;  %s1012_s30 = int_to_ptr.vmem [resolvable:$true] %s1011_s30 }
  0x32   : > { %s284_s9 = scalar_lea.vmem %s1955_s0, %s1127_s6  ;;  %v1668_v51 = vld [vmem:[%s1634_s20 + $0x28] sm:$0xf]  ;;  %v1675_v63 = vld [vmem:[%s1634_s20 + $0x20] sm:$0xf]  ;;  %v1678_v0 = vld [vmem:[%s1634_s20 + $0x30] sm:$0xf] }
  0x33   : > { %v286_v9 = vld [vmem:[%s284_s9] sm:$0xff]  ;;  %v287_v13 = vld [vmem:[%s284_s9 + $0x8] sm:$0xff]  ;;  %v288_v17 = vld [vmem:[%s284_s9 + $0x10] sm:$0xff]  ;;  %s1013_s5 = sshll.u32 %s1010_s15, 4  ;;  %s998_s6 = scalar_lea.sflag [#allocation5], %s244_s10  ;;  %s1014_s5 = int_to_ptr.hbm [resolvable:$true] %s1013_s5 }
  0x34   : > { %v290_v10 = vld [vmem:[%s284_s9 + $0x20] sm:$0xff]  ;;  %1129 = vmatmul.msk.f32.vlgmr.msra.gmra.mxu0 %vm303_vm1, %v286_v9  ;;  %v291_v14 = vld [vmem:[%s284_s9 + $0x28] sm:$0xff]  ;;  %v292_v18 = vld [vmem:[%s284_s9 + $0x30] sm:$0xff]  ;;  %s1411_s7 = sshra.s32 %s1014_s5, 4  ;;  %s1412_s7 = int_to_ptr.hbm [resolvable:$true] %s1411_s7 }
  0x35   : > { %v294_v11 = vld [vmem:[%s284_s9 + $0x40] sm:$0xff]  ;;  %1133 = vmatmul.msk.f32.vlgmr.msra.gmra.mxu1 %vm303_vm1, %v290_v10  ;;  %v295_v15 = vld [vmem:[%s284_s9 + $0x48] sm:$0xff]  ;;  %v296_v19 = vld [vmem:[%s284_s9 + $0x50] sm:$0xff]  ;;  %s1413_s8 = scalar_lea.hbm %s1412_s7, 64  ;;  %p1418_p6 = scmp.lt.s32.totalorder %s1412_s7, %s1958_s3 }
  0x36   : > { %v298_v12 = vld [vmem:[%s284_s9 + $0x60] sm:$0xff]  ;;  %1137 = vmatmul.msk.f32.vlgmr.msra.gmra.mxu2 %vm303_vm1, %v294_v11  ;;  %v299_v16 = vld [vmem:[%s284_s9 + $0x68] sm:$0xff]  ;;  %v300_v20 = vld [vmem:[%s284_s9 + $0x70] sm:$0xff]  ;;  %p1414_p3 = scmp.ne.s32.totalorder %s1412_s7, %s1413_s8 }
  0x37   : > { %1141 = vmatmul.msk.f32.vlgmr.msra.gmra.mxu3 %vm303_vm1, %v298_v12  ;;  %v289_v21 = vld [vmem:[%s284_s9 + $0x18] sm:$0xff] }
  0x38   : > { %v293_v22 = vld [vmem:[%s284_s9 + $0x38] sm:$0xff]  ;;  %p1415_p4 = pnand %p1414_p3, %p1576_p8 }
  0x39   : > { %v297_v23 = vld [vmem:[%s284_s9 + $0x58] sm:$0xff] }
  0x3a   : > { %v301_v24 = vld [vmem:[%s284_s9 + $0x78] sm:$0xff]  ;;  %p1416_p5 = pneg %p1415_p4 }
  0x3b   : > { %v1685_v8 = vld [vmem:[%s1634_s20 + $0x38] sm:$0xf] }
  0x3c   : > { %1130 = vmatmul.msk.f32.gmra.mxu0 %vm303_vm1, %v287_v13 }
  0x3d   : > { %1134 = vmatmul.msk.f32.gmra.mxu1 %vm303_vm1, %v291_v14 }
  0x3e   : > { %1138 = vmatmul.msk.f32.gmra.mxu2 %vm303_vm1, %v295_v15  ;;  %v1691_v15 = vld [vmem:[%s1634_s20 + $0x28] sm:$0xf] }
  0x3f   : > { %1142 = vmatmul.msk.f32.gmra.mxu3 %vm303_vm1, %v299_v16 }
  0x44   : > { %1131 = vmatmul.msk.f32.gmra.mxu0 %vm303_vm1, %v288_v17 }
  0x45   : > { %1135 = vmatmul.msk.f32.gmra.mxu1 %vm303_vm1, %v292_v18  ;;  %v1695_v18 = vld [vmem:[%s1634_s20 + $0x30] sm:$0xf] }
  0x46   : > { %1139 = vmatmul.msk.f32.gmra.mxu2 %vm303_vm1, %v296_v19 }
  0x47   : > { %1143 = vmatmul.msk.f32.gmra.mxu3 %vm303_vm1, %v300_v20 }
  0x4c   : > { %1132 = vmatmul.msk.f32.gmra.mxu0 %vm303_vm1, %v289_v21 }
  0x4d   : > { %1136 = vmatmul.msk.f32.gmra.mxu1 %vm303_vm1, %v293_v22  ;;  %v1700_v22 = vld [vmem:[%s1634_s20 + $0x38] sm:$0xf] }
  0x4e   : > { %1140 = vmatmul.msk.f32.gmra.mxu2 %vm303_vm1, %v297_v23  ;;  %v1703_v23 = vld [vmem:[%s1634_s20 + $0x4] sm:$0xf] }
  0x4f   : > { %1144 = vmatmul.msk.f32.gmra.mxu3 %vm303_vm1, %v301_v24 }
  0xb1   : > { %v373_v25 = vpop.f32.mrf.mxu0 }
  0xb2   : > { %v385_v26 = vpop.f32.mrf.mxu1  ;;  %422 = vst.msk [vmem:[#allocation2] sm:$0xff] %vm421_vm2, %v373_v25 }
  0xb3   : > { %426 = vst.msk [vmem:[#allocation2 + $0x20] sm:$0xff] %vm421_vm2, %v385_v26 }
  0xb9   : > { %v1269_v30 = vld [vmem:[#allocation2] ss:$0 sm:$0xff]  ;;  %v1270_v32 = vld [vmem:[#allocation2 + $0x1] ss:$0 sm:$0xff]  ;;  %v1271_v33 = vld [vmem:[#allocation2 + $0x2] ss:$0 sm:$0xff]  ;;  %v397_v34 = vpop.f32.mrf.mxu2  ;;  %v376_v44 = vpop.f32.mrf.mxu0 }
  0xba   : > { %v441_v35 = vmul.f32 %v1269_v30, %v1637_v27  ;;  %v1272_v36 = vld [vmem:[#allocation2 + $0x3] ss:$0 sm:$0xff]  ;;  %v409_v38 = vpop.f32.mrf.mxu3  ;;  %v455_v39 = vmul.f32 %v1270_v32, %v1640_v28  ;;  %v473_v40 = vmul.f32 %v1271_v33, %v1643_v29  ;;  %v1273_v42 = vld [vmem:[#allocation2 + $0x4] ss:$0 sm:$0xff]  ;;  %v1274_v48 = vld [vmem:[#allocation2 + $0x5] ss:$0 sm:$0xff]  ;;  %v388_v3 = vpop.f32.mrf.mxu1 }
  0xbb   : > { %v491_v47 = vmul.f32 %v1272_v36, %v1646_v31  ;;  %v1277_v49 = vld [vmem:[#allocation2 + $0x20] ss:$0 sm:$0xff]  ;;  %v1278_v52 = vld [vmem:[#allocation2 + $0x21] ss:$0 sm:$0xff]  ;;  %v509_v54 = vmul.f32 %v1273_v42, %v1655_v41  ;;  %v1279_v56 = vld [vmem:[#allocation2 + $0x22] ss:$0 sm:$0xff]  ;;  %v527_v5 = vmul.f32 %v1274_v48, %v1668_v51 }
  0xbc   : > { %v456_v46 = vadd.f32 %v455_v39, %v441_v35  ;;  %v588_v55 = vmul.f32 %v1277_v49, %v1650_v37  ;;  %v1280_v57 = vld [vmem:[#allocation2 + $0x23] ss:$0 sm:$0xff]  ;;  %v601_v58 = vmul.f32 %v1278_v52, %v1658_v43  ;;  %v1281_v59 = vld [vmem:[#allocation2 + $0x24] ss:$0 sm:$0xff]  ;;  %v1275_v61 = vld [vmem:[#allocation2 + $0x6] ss:$0 sm:$0xff]  ;;  %v618_v62 = vmul.f32 %v1279_v56, %v1661_v45 }
  0xbd   : > { %v635_v2 = vmul.f32 %v1280_v57, %v1665_v50  ;;  %430 = vst.msk [vmem:[#allocation2 + $0x40] sm:$0xff] %vm421_vm2, %v397_v34  ;;  %v1276_v6 = vld [vmem:[#allocation2 + $0x7] ss:$0 sm:$0xff]  ;;  %v652_v10 = vmul.f32 %v1281_v59, %v1675_v63  ;;  %v1282_v11 = vld [vmem:[#allocation2 + $0x25] ss:$0 sm:$0xff]  ;;  %v545_v14 = vmul.f32 %v1275_v61, %v1678_v0 }
  0xbe   : > { %v474_v53 = vadd.f32 %v473_v40, %v456_v46  ;;  %v602_v1 = vadd.f32 %v601_v58, %v588_v55  ;;  %434 = vst.msk [vmem:[#allocation2 + $0x60] sm:$0xff] %vm421_vm2, %v409_v38  ;;  %v1283_v19 = vld [vmem:[#allocation2 + $0x26] ss:$0 sm:$0xff]  ;;  %v563_v21 = vmul.f32 %v1276_v6, %v1685_v8  ;;  %v669_v25 = vmul.f32 %v1282_v11, %v1691_v15  ;;  %v1284_v26 = vld [vmem:[#allocation2 + $0x27] ss:$0 sm:$0xff] }
  0xbf   : > { %423 = vst.msk [vmem:[#allocation2 + $0x8] sm:$0xff] %vm421_vm2, %v376_v44  ;;  %v1708_v30 = vld [vmem:[%s1634_s20 + $0xc] sm:$0xf]  ;;  %v1712_v34 = vld [vmem:[%s1634_s20 + $0x14] sm:$0xf]  ;;  %v686_v36 = vmul.f32 %v1283_v19, %v1695_v18  ;;  %v703_v46 = vmul.f32 %v1284_v26, %v1700_v22 }
  0xc0   : > { %v492_v60 = vadd.f32 %v491_v47, %v474_v53  ;;  %v619_v9 = vadd.f32 %v618_v62, %v602_v1  ;;  %427 = vst.msk [vmem:[#allocation2 + $0x28] sm:$0xff] %vm421_vm2, %v388_v3  ;;  %v1722_v42 = vld [vmem:[%s1634_s20 + $0x1c] sm:$0xf]  ;;  %v1727_v49 = vld [vmem:[%s1634_s20 + $0x4] sm:$0xf] }
  0xc1   : > { %v400_v7 = vpop.f32.mrf.mxu2  ;;  %v379_v16 = vpop.f32.mrf.mxu0  ;;  %v1730_v52 = vld [vmem:[%s1634_s20 + $0x24] sm:$0xf]  ;;  %v1737_v59 = vld [vmem:[%s1634_s20 + $0x14] sm:$0xf] }
  0xc2   : > { %v510_v4 = vadd.f32 %v509_v54, %v492_v60  ;;  %v412_v12 = vpop.f32.mrf.mxu3  ;;  %v636_v17 = vadd.f32 %v635_v2, %v619_v9  ;;  %431 = vst.msk [vmem:[#allocation2 + $0x48] sm:$0xff] %vm421_vm2, %v400_v7  ;;  %v1733_v54 = vld [vmem:[%s1634_s20 + $0xc] sm:$0xf] }
  0xc3   : > { %435 = vst.msk [vmem:[#allocation2 + $0x68] sm:$0xff] %vm421_vm2, %v412_v12  ;;  %v1740_v60 = vld [vmem:[%s1634_s20 + $0x2c] sm:$0xf] }
  0xc4   : > { %v528_v13 = vadd.f32 %v527_v5, %v510_v4  ;;  %v653_v24 = vadd.f32 %v652_v10, %v636_v17  ;;  %424 = vst.msk [vmem:[#allocation2 + $0x10] sm:$0xff] %vm421_vm2, %v379_v16  ;;  %v1285_v33 = vld [vmem:[#allocation2 + $0x40] ss:$0 sm:$0xff]  ;;  %v1286_v38 = vld [vmem:[#allocation2 + $0x41] ss:$0 sm:$0xff] }
  0xc5   : > { %v1287_v39 = vld [vmem:[#allocation2 + $0x42] ss:$0 sm:$0xff]  ;;  %v728_v40 = vmul.f32 %v1285_v33, %v1703_v23  ;;  %v741_v47 = vmul.f32 %v1286_v38, %v1708_v30  ;;  %v1288_v48 = vld [vmem:[#allocation2 + $0x43] ss:$0 sm:$0xff]  ;;  %v1289_v53 = vld [vmem:[#allocation2 + $0x44] ss:$0 sm:$0xff] }
  0xc6   : > { %v546_v20 = vadd.f32 %v545_v14, %v528_v13  ;;  %v670_v35 = vadd.f32 %v669_v25, %v653_v24  ;;  %v758_v57 = vmul.f32 %v1287_v39, %v1712_v34  ;;  %v1290_v58 = vld [vmem:[#allocation2 + $0x45] ss:$0 sm:$0xff]  ;;  %v1293_v61 = vld [vmem:[#allocation2 + $0x60] ss:$0 sm:$0xff]  ;;  %v1294_v62 = vld [vmem:[#allocation2 + $0x61] ss:$0 sm:$0xff]  ;;  %v775_v2 = vmul.f32 %v1288_v48, %v1722_v42 }
  0xc7   : > { %v742_v56 = vadd.f32 %v741_v47, %v728_v40  ;;  %v1295_v3 = vld [vmem:[#allocation2 + $0x62] ss:$0 sm:$0xff]  ;;  %v1746_v4 = vld [vmem:[%s1634_s20 + $0x1c] sm:$0xf]  ;;  %v1749_v5 = vld [vmem:[%s1634_s20 + $0x34] sm:$0xf]  ;;  %v864_v6 = vmul.f32 %v1293_v61, %v1727_v49  ;;  %v877_v7 = vmul.f32 %v1294_v62, %v1733_v54  ;;  %v792_v11 = vmul.f32 %v1289_v53, %v1730_v52 }
  0xc8   : > { %v564_v32 = vadd.f32 %v563_v21, %v546_v20  ;;  %v687_v44 = vadd.f32 %v686_v36, %v670_v35  ;;  %v1296_v9 = vld [vmem:[#allocation2 + $0x63] ss:$0 sm:$0xff]  ;;  %v1291_v12 = vld [vmem:[#allocation2 + $0x46] ss:$0 sm:$0xff]  ;;  %v1292_v13 = vld [vmem:[#allocation2 + $0x47] ss:$0 sm:$0xff]  ;;  %v894_v19 = vmul.f32 %v1295_v3, %v1737_v59  ;;  %v809_v24 = vmul.f32 %v1290_v58, %v1740_v60 }
  0xc9   : > { %v759_v1 = vadd.f32 %v758_v57, %v742_v56  ;;  %v1755_v14 = vld [vmem:[%s1634_s20 + $0x24] sm:$0xf]  ;;  %v1758_v16 = vld [vmem:[%s1634_s20 + $0x3c] sm:$0xf]  ;;  %v878_v17 = vadd.f32 %v877_v7, %v864_v6  ;;  %v1763_v25 = vld [vmem:[%s1634_s20 + $0x2c] sm:$0xf]  ;;  %v911_v35 = vmul.f32 %v1296_v9, %v1746_v4  ;;  %v826_v40 = vmul.f32 %v1291_v12, %v1749_v5 }
  0xca   : > { %578 = vst.msk [vmem:[%s1716_s21] sm:$0xf] %vm577_vm3, %v564_v32  ;;  %v704_v55 = vadd.f32 %v703_v46, %v687_v44  ;;  %v1297_v20 = vld [vmem:[#allocation2 + $0x64] ss:$0 sm:$0xff]  ;;  %v1298_v26 = vld [vmem:[#allocation2 + $0x65] ss:$0 sm:$0xff]  ;;  %v843_v61 = vmul.f32 %v1292_v13, %v1758_v16 }
  0xcb   : > { %v776_v10 = vadd.f32 %v775_v2, %v759_v1  ;;  %v1301_v32 = vld [vmem:[#allocation2 + $0x8] ss:$0 sm:$0xff]  ;;  %v895_v33 = vadd.f32 %v894_v19, %v878_v17  ;;  %v1299_v36 = vld [vmem:[#allocation2 + $0x66] ss:$0 sm:$0xff]  ;;  %v1302_v38 = vld [vmem:[#allocation2 + $0x9] ss:$0 sm:$0xff]  ;;  %v945_v6 = vmul.f32 %v1298_v26, %v1763_v25 }
  0xcc   : > { %1162 = vst.msk [vmem:[%s1716_s21 + $0x20] sm:$0xf] %vm577_vm3, %v704_v55  ;;  %v1768_v44 = vld [vmem:[%s1634_s20 + $0x34] sm:$0xf]  ;;  %v444_v46 = vmul.f32 %v1301_v32, %v1637_v27  ;;  %v1303_v47 = vld [vmem:[#allocation2 + $0xa] ss:$0 sm:$0xff]  ;;  %v928_v55 = vmul.f32 %v1297_v20, %v1755_v14  ;;  %v459_v56 = vmul.f32 %v1302_v38, %v1640_v28 }
  0xcd   : > { %v793_v21 = vadd.f32 %v792_v11, %v776_v10  ;;  %v1304_v48 = vld [vmem:[#allocation2 + $0xb] ss:$0 sm:$0xff]  ;;  %v912_v53 = vadd.f32 %v911_v35, %v895_v33  ;;  %v1305_v57 = vld [vmem:[#allocation2 + $0xc] ss:$0 sm:$0xff]  ;;  %v1775_v62 = vld [vmem:[%s1634_s20 + $0x3c] sm:$0xf]  ;;  %v477_v2 = vmul.f32 %v1303_v47, %v1643_v29  ;;  %v962_v20 = vmul.f32 %v1299_v36, %v1768_v44 }
  0xce   : > { %v1300_v1 = vld [vmem:[#allocation2 + $0x67] ss:$0 sm:$0xff]  ;;  %v460_v7 = vadd.f32 %v459_v56, %v444_v46  ;;  %v495_v9 = vmul.f32 %v1304_v48, %v1646_v31  ;;  %v1306_v10 = vld [vmem:[#allocation2 + $0xd] ss:$0 sm:$0xff]  ;;  %v1309_v12 = vld [vmem:[#allocation2 + $0x28] ss:$0 sm:$0xff] }
  0xcf   : > { %v810_v39 = vadd.f32 %v809_v24, %v793_v21  ;;  %v929_v3 = vadd.f32 %v928_v55, %v912_v53  ;;  %v1310_v17 = vld [vmem:[#allocation2 + $0x29] ss:$0 sm:$0xff]  ;;  %v513_v21 = vmul.f32 %v1305_v57, %v1655_v41  ;;  %v1311_v24 = vld [vmem:[#allocation2 + $0x2a] ss:$0 sm:$0xff]  ;;  %v591_v32 = vmul.f32 %v1309_v12, %v1650_v37  ;;  %v1312_v33 = vld [vmem:[#allocation2 + $0x2b] ss:$0 sm:$0xff] }
  0xd0   : > { %v478_v13 = vadd.f32 %v477_v2, %v460_v7  ;;  %v605_v26 = vmul.f32 %v1310_v17, %v1658_v43  ;;  %v979_v38 = vmul.f32 %v1300_v1, %v1775_v62  ;;  %v622_v46 = vmul.f32 %v1311_v24, %v1661_v45  ;;  %v1313_v36 = vld [vmem:[#allocation2 + $0x2c] ss:$0 sm:$0xff]  ;;  %v1308_v47 = vld [vmem:[#allocation2 + $0xf] ss:$0 sm:$0xff]  ;;  %v1318_v1 = vld [vmem:[#allocation2 + $0x49] ss:$0 sm:$0xff] }
  0xd1   : > { %v827_v58 = vadd.f32 %v826_v40, %v810_v39  ;;  %v946_v19 = vadd.f32 %v945_v6, %v929_v3  ;;  %v1307_v40 = vld [vmem:[#allocation2 + $0xe] ss:$0 sm:$0xff]  ;;  %v639_v53 = vmul.f32 %v1312_v33, %v1665_v50  ;;  %v531_v57 = vmul.f32 %v1306_v10, %v1668_v51  ;;  %s1417_s20 = scalar_lea.hbm %s1958_s3, 256 }
  0xd2   : > { %v496_v39 = vadd.f32 %v495_v9, %v478_v13  ;;  %v606_v48 = vadd.f32 %v605_v26, %v591_v32  ;;  %v656_v3 = vmul.f32 %v1313_v36, %v1675_v63  ;;  %v549_v7 = vmul.f32 %v1307_v40, %v1678_v0  ;;  %v1315_v17 = vld [vmem:[#allocation2 + $0x2e] ss:$0 sm:$0xff]  ;;  %v1325_v40 = vld [vmem:[#allocation2 + $0x68] ss:$0 sm:$0xff]  ;;  %p1419_p7 = scmp.lt.s32.totalorder %s1417_s20, %s1413_s8 }
  0xd3   : > { %v844_v11 = vadd.f32 %v843_v61, %v827_v58  ;;  %v963_v35 = vadd.f32 %v962_v20, %v946_v19  ;;  %v1314_v58 = vld [vmem:[#allocation2 + $0x2d] ss:$0 sm:$0xff]  ;;  %v1317_v61 = vld [vmem:[#allocation2 + $0x48] ss:$0 sm:$0xff]  ;;  %v745_v19 = vmul.f32 %v1318_v1, %v1708_v30  ;;  %v1320_v20 = vld [vmem:[#allocation2 + $0x4b] ss:$0 sm:$0xff]  ;;  %v567_v13 = vmul.f32 %v1308_v47, %v1685_v8 }
  0xd4   : > { %v514_v56 = vadd.f32 %v513_v21, %v496_v39  ;;  %v623_v2 = vadd.f32 %v622_v46, %v606_v48  ;;  %v731_v9 = vmul.f32 %v1317_v61, %v1703_v23  ;;  %v1316_v21 = vld [vmem:[#allocation2 + $0x2f] ss:$0 sm:$0xff]  ;;  %v673_v32 = vmul.f32 %v1314_v58, %v1691_v15  ;;  %v1327_v47 = vld [vmem:[#allocation2 + $0x6a] ss:$0 sm:$0xff]  ;;  %p1420_p10 = por %p1419_p7, %p1418_p6 }
  0xd5   : > { %857 = vst.msk [vmem:[%s1716_s21 + $0x4] sm:$0xf] %vm577_vm3, %v844_v11  ;;  %v980_v55 = vadd.f32 %v979_v38, %v963_v35  ;;  %v1319_v11 = vld [vmem:[#allocation2 + $0x4a] ss:$0 sm:$0xff]  ;;  %v1321_v35 = vld [vmem:[#allocation2 + $0x4c] ss:$0 sm:$0xff]  ;;  %v690_v36 = vmul.f32 %v1315_v17, %v1695_v18  ;;  %v867_v58 = vmul.f32 %v1325_v40, %v1727_v49  ;;  %v403_v17 = vpop.f32.mrf.mxu2 }
  0xd6   : > { %v532_v6 = vadd.f32 %v531_v57, %v514_v56  ;;  %v640_v12 = vadd.f32 %v639_v53, %v623_v2  ;;  %v746_v26 = vadd.f32 %v745_v19, %v731_v9  ;;  %v762_v33 = vmul.f32 %v1319_v11, %v1712_v34  ;;  %v1322_v38 = vld [vmem:[#allocation2 + $0x4d] ss:$0 sm:$0xff]  ;;  %v1323_v57 = vld [vmem:[#allocation2 + $0x4e] ss:$0 sm:$0xff]  ;;  %v1324_v11 = vld [vmem:[#allocation2 + $0x4f] ss:$0 sm:$0xff]  ;;  %p1421_p11 = pnand %p1420_p10, %p1416_p5 }
  0xd7   : > { %1183 = vst.msk [vmem:[%s1716_s21 + $0x24] sm:$0xf] %vm577_vm3, %v980_v55  ;;  %v779_v53 = vmul.f32 %v1320_v20, %v1722_v42  ;;  %v1326_v55 = vld [vmem:[#allocation2 + $0x69] ss:$0 sm:$0xff]  ;;  %v707_v56 = vmul.f32 %v1316_v21, %v1700_v22  ;;  %v813_v9 = vmul.f32 %v1322_v38, %v1740_v60  ;;  %v1330_v21 = vld [vmem:[#allocation2 + $0x6d] ss:$0 sm:$0xff]  ;;  %v847_v40 = vmul.f32 %v1324_v11, %v1758_v16  ;;  %v415_v11 = vpop.f32.mrf.mxu3 }
  0xd8   : > { %v550_v10 = vadd.f32 %v549_v7, %v532_v6  ;;  %v657_v24 = vadd.f32 %v656_v3, %v640_v12  ;;  %v763_v48 = vadd.f32 %v762_v33, %v746_v26  ;;  %v796_v3 = vmul.f32 %v1321_v35, %v1730_v52  ;;  %v1328_v6 = vld [vmem:[#allocation2 + $0x6b] ss:$0 sm:$0xff]  ;;  %v391_v7 = vpop.f32.mrf.mxu1  ;;  %v1329_v12 = vld [vmem:[#allocation2 + $0x6c] ss:$0 sm:$0xff]  ;;  %v1335_v38 = vld [vmem:[#allocation2 + $0x12] ss:$0 sm:$0xff] }
  0xd9   : > { %v881_v1 = vmul.f32 %v1326_v55, %v1733_v54  ;;  %v830_v33 = vmul.f32 %v1323_v57, %v1749_v5  ;;  %v1337_v57 = vld [vmem:[#allocation2 + $0x14] ss:$0 sm:$0xff]  ;;  %428 = vst.msk [vmem:[#allocation2 + $0x30] sm:$0xff] %vm421_vm2, %v391_v7 }
  0xda   : > { %v568_v39 = vadd.f32 %v567_v13, %v550_v10  ;;  %v674_v46 = vadd.f32 %v673_v32, %v657_v24  ;;  %v780_v2 = vadd.f32 %v779_v53, %v763_v48  ;;  %v898_v13 = vmul.f32 %v1327_v47, %v1737_v59  ;;  %v1333_v24 = vld [vmem:[#allocation2 + $0x10] ss:$0 sm:$0xff]  ;;  %v1334_v32 = vld [vmem:[#allocation2 + $0x11] ss:$0 sm:$0xff]  ;;  %v1336_v48 = vld [vmem:[#allocation2 + $0x13] ss:$0 sm:$0xff] }
  0xdb   : > { %v882_v10 = vadd.f32 %v881_v1, %v867_v58  ;;  %v932_v47 = vmul.f32 %v1329_v12, %v1755_v14  ;;  %v481_v58 = vmul.f32 %v1335_v38, %v1643_v29  ;;  %v1338_v12 = vld [vmem:[#allocation2 + $0x15] ss:$0 sm:$0xff]  ;;  %432 = vst.msk [vmem:[#allocation2 + $0x50] sm:$0xff] %vm421_vm2, %v403_v17  ;;  %v1340_v38 = vld [vmem:[#allocation2 + $0x17] ss:$0 sm:$0xff] }
  0xdc   : > { %1152 = vst.msk [vmem:[%s1716_s21 + $0x8] sm:$0xf] %vm577_vm3, %v568_v39  ;;  %v691_v61 = vadd.f32 %v690_v36, %v674_v46  ;;  %v797_v20 = vadd.f32 %v796_v3, %v780_v2  ;;  %v915_v39 = vmul.f32 %v1328_v6, %v1746_v4  ;;  %v447_v46 = vmul.f32 %v1333_v24, %v1637_v27 }
  0xdd   : > { %v899_v35 = vadd.f32 %v898_v13, %v882_v10  ;;  %v463_v36 = vmul.f32 %v1334_v32, %v1640_v28  ;;  %v499_v2 = vmul.f32 %v1336_v48, %v1646_v31  ;;  %v949_v6 = vmul.f32 %v1330_v21, %v1763_v25  ;;  %v382_v10 = vpop.f32.mrf.mxu0  ;;  %v1339_v21 = vld [vmem:[#allocation2 + $0x16] ss:$0 sm:$0xff]  ;;  %436 = vst.msk [vmem:[#allocation2 + $0x70] sm:$0xff] %vm421_vm2, %v415_v11  ;;  %v406_v7 = vpop.f32.mrf.mxu2 }
  0xde   : > { %v708_v19 = vadd.f32 %v707_v56, %v691_v61  ;;  %v814_v26 = vadd.f32 %v813_v9, %v797_v20  ;;  %v1331_v56 = vld [vmem:[#allocation2 + $0x6e] ss:$0 sm:$0xff]  ;;  %v1332_v9 = vld [vmem:[#allocation2 + $0x6f] ss:$0 sm:$0xff]  ;;  %v517_v20 = vmul.f32 %v1337_v57, %v1655_v41  ;;  %425 = vst.msk [vmem:[#allocation2 + $0x18] sm:$0xff] %vm421_vm2, %v382_v10  ;;  %v535_v17 = vmul.f32 %v1338_v12, %v1668_v51 }
  0xdf   : > { %v916_v55 = vadd.f32 %v915_v39, %v899_v35  ;;  %v464_v61 = vadd.f32 %v463_v36, %v447_v46  ;;  %v966_v24 = vmul.f32 %v1331_v56, %v1768_v44  ;;  %v983_v35 = vmul.f32 %v1332_v9, %v1775_v62  ;;  %433 = vst.msk [vmem:[#allocation2 + $0x58] sm:$0xff] %vm421_vm2, %v406_v7 }
  0xe0   : > { %1163 = vst.msk [vmem:[%s1716_s21 + $0x28] sm:$0xf] %vm577_vm3, %v708_v19  ;;  %v831_v53 = vadd.f32 %v830_v33, %v814_v26  ;;  %v394_v32 = vpop.f32.mrf.mxu1  ;;  %v553_v36 = vmul.f32 %v1339_v21, %v1678_v0  ;;  %v1341_v48 = vld [vmem:[#allocation2 + $0x30] ss:$0 sm:$0xff]  ;;  %v1344_v57 = vld [vmem:[#allocation2 + $0x33] ss:$0 sm:$0xff] }
  0xe1   : > { %v933_v1 = vadd.f32 %v932_v47, %v916_v55  ;;  %v482_v19 = vadd.f32 %v481_v58, %v464_v61  ;;  %429 = vst.msk [vmem:[#allocation2 + $0x38] sm:$0xff] %vm421_vm2, %v394_v32  ;;  %v571_v47 = vmul.f32 %v1340_v38, %v1685_v8  ;;  %v594_v56 = vmul.f32 %v1341_v48, %v1650_v37  ;;  %v1343_v58 = vld [vmem:[#allocation2 + $0x32] ss:$0 sm:$0xff]  ;;  %v1346_v11 = vld [vmem:[#allocation2 + $0x35] ss:$0 sm:$0xff] }
  0xe2   : > { %v848_v3 = vadd.f32 %v847_v40, %v831_v53  ;;  %v1342_v53 = vld [vmem:[#allocation2 + $0x31] ss:$0 sm:$0xff]  ;;  %v643_v9 = vmul.f32 %v1344_v57, %v1665_v50  ;;  %v1348_v21 = vld [vmem:[#allocation2 + $0x37] ss:$0 sm:$0xff] }
  0xe3   : > { %v950_v13 = vadd.f32 %v949_v6, %v933_v1  ;;  %v500_v26 = vadd.f32 %v499_v2, %v482_v19  ;;  %v609_v61 = vmul.f32 %v1342_v53, %v1658_v43  ;;  %v1345_v2 = vld [vmem:[#allocation2 + $0x34] ss:$0 sm:$0xff]  ;;  %v626_v1 = vmul.f32 %v1343_v58, %v1661_v45  ;;  %v1349_v19 = vld [vmem:[#allocation2 + $0x50] ss:$0 sm:$0xff]  ;;  %v1350_v10 = vld [vmem:[#allocation2 + $0x51] ss:$0 sm:$0xff] }
  0xe4   : > { %1173 = vst.msk [vmem:[%s1716_s21 + $0xc] sm:$0xf] %vm577_vm3, %v848_v3  ;;  %v660_v12 = vmul.f32 %v1345_v2, %v1675_v63  ;;  %v734_v32 = vmul.f32 %v1349_v19, %v1703_v23  ;;  %v749_v7 = vmul.f32 %v1350_v10, %v1708_v30  ;;  %v1358_v53 = vld [vmem:[#allocation2 + $0x71] ss:$0 sm:$0xff]  ;;  %v1355_v58 = vld [vmem:[#allocation2 + $0x56] ss:$0 sm:$0xff] }
  0xe5   : > { %v967_v33 = vadd.f32 %v966_v24, %v950_v13  ;;  %v518_v39 = vadd.f32 %v517_v20, %v500_v26  ;;  %v610_v6 = vadd.f32 %v609_v61, %v594_v56  ;;  %v1351_v13 = vld [vmem:[#allocation2 + $0x52] ss:$0 sm:$0xff]  ;;  %v1347_v24 = vld [vmem:[#allocation2 + $0x36] ss:$0 sm:$0xff]  ;;  %v885_v2 = vmul.f32 %v1358_v53, %v1733_v54  ;;  %v1356_v19 = vld [vmem:[#allocation2 + $0x57] ss:$0 sm:$0xff] }
  0xe6   : > { %v750_v38 = vadd.f32 %v749_v7, %v734_v32  ;;  %v694_v48 = vmul.f32 %v1347_v24, %v1695_v18  ;;  %v1359_v61 = vld [vmem:[#allocation2 + $0x72] ss:$0 sm:$0xff]  ;;  %v1365_v7 = vld [vmem:[#allocation2 + $0x18] ss:$0 sm:$0xff] }
  0xe7   : > { %v984_v40 = vadd.f32 %v983_v35, %v967_v33  ;;  %v536_v46 = vadd.f32 %v535_v17, %v518_v39  ;;  %v627_v20 = vadd.f32 %v626_v1, %v610_v6  ;;  %v1352_v33 = vld [vmem:[#allocation2 + $0x53] ss:$0 sm:$0xff]  ;;  %v1353_v35 = vld [vmem:[#allocation2 + $0x54] ss:$0 sm:$0xff]  ;;  %v677_v17 = vmul.f32 %v1346_v11, %v1691_v15 }
  0xe8   : > { %v783_v56 = vmul.f32 %v1352_v33, %v1722_v42  ;;  %v711_v6 = vmul.f32 %v1348_v21, %v1700_v22  ;;  %v800_v11 = vmul.f32 %v1353_v35, %v1730_v52  ;;  %v902_v10 = vmul.f32 %v1359_v61, %v1737_v59  ;;  %v1366_v33 = vld [vmem:[#allocation2 + $0x19] ss:$0 sm:$0xff]  ;;  %v1367_v21 = vld [vmem:[#allocation2 + $0x1a] ss:$0 sm:$0xff] }
  0xe9   : > { %1184 = vst.msk [vmem:[%s1716_s21 + $0x2c] sm:$0xf] %vm577_vm3, %v984_v40  ;;  %v554_v55 = vadd.f32 %v553_v36, %v536_v46  ;;  %v644_v26 = vadd.f32 %v643_v9, %v627_v20  ;;  %v766_v40 = vmul.f32 %v1351_v13, %v1712_v34  ;;  %v1354_v46 = vld [vmem:[#allocation2 + $0x55] ss:$0 sm:$0xff]  ;;  %v1357_v36 = vld [vmem:[#allocation2 + $0x70] ss:$0 sm:$0xff]  ;;  %v834_v35 = vmul.f32 %v1355_v58, %v1749_v5 }
  0xea   : > { %v870_v57 = vmul.f32 %v1357_v36, %v1727_v49  ;;  %v1361_v20 = vld [vmem:[#allocation2 + $0x74] ss:$0 sm:$0xff]  ;;  %v1362_v13 = vld [vmem:[#allocation2 + $0x75] ss:$0 sm:$0xff]  ;;  %v467_v36 = vmul.f32 %v1366_v33, %v1640_v28  ;;  %v851_v61 = vmul.f32 %v1356_v19, %v1758_v16  ;;  %v1370_v28 = vld [vmem:[#allocation2 + $0x1d] ss:$0 sm:$0xff] }
  0xeb   : > { %v572_v3 = vadd.f32 %v571_v47, %v554_v55  ;;  %v661_v39 = vadd.f32 %v660_v12, %v644_v26  ;;  %v767_v47 = vadd.f32 %v766_v40, %v750_v38  ;;  %v817_v26 = vmul.f32 %v1354_v46, %v1740_v60  ;;  %v1363_v46 = vld [vmem:[#allocation2 + $0x76] ss:$0 sm:$0xff] }
  0xec   : > { %v886_v12 = vadd.f32 %v885_v2, %v870_v57  ;;  %v450_v40 = vmul.f32 %v1365_v7, %v1637_v27  ;;  %v1364_v2 = vld [vmem:[#allocation2 + $0x77] ss:$0 sm:$0xff]  ;;  %v953_v27 = vmul.f32 %v1362_v13, %v1763_v25  ;;  %v1377_v7 = vld [vmem:[#allocation2 + $0x3c] ss:$0 sm:$0xff] }
  0xed   : > { %1153 = vst.msk [vmem:[%s1716_s21 + $0x10] sm:$0xf] %vm577_vm3, %v572_v3  ;;  %v678_v55 = vadd.f32 %v677_v17, %v661_v39  ;;  %v1360_v3 = vld [vmem:[#allocation2 + $0x73] ss:$0 sm:$0xff]  ;;  %v784_v9 = vadd.f32 %v783_v56, %v767_v47  ;;  %v485_v47 = vmul.f32 %v1367_v21, %v1643_v29  ;;  %v1369_v56 = vld [vmem:[#allocation2 + $0x1c] ss:$0 sm:$0xff]  ;;  %v539_v21 = vmul.f32 %v1370_v28, %v1668_v51 }
  0xee   : > { %v903_v39 = vadd.f32 %v902_v10, %v886_v12  ;;  %v919_v17 = vmul.f32 %v1360_v3, %v1746_v4  ;;  %v468_v3 = vadd.f32 %v467_v36, %v450_v40  ;;  %v1371_v12 = vld [vmem:[#allocation2 + $0x1e] ss:$0 sm:$0xff]  ;;  %v1374_v29 = vld [vmem:[#allocation2 + $0x39] ss:$0 sm:$0xff]  ;;  %v1378_v40 = vld [vmem:[#allocation2 + $0x3d] ss:$0 sm:$0xff] }
  0xef   : > { %v695_v1 = vadd.f32 %v694_v48, %v678_v55  ;;  %v801_v32 = vadd.f32 %v800_v11, %v784_v9  ;;  %v1368_v48 = vld [vmem:[#allocation2 + $0x1b] ss:$0 sm:$0xff]  ;;  %v936_v55 = vmul.f32 %v1361_v20, %v1755_v14  ;;  %v521_v20 = vmul.f32 %v1369_v56, %v1655_v41  ;;  %v1383_v56 = vld [vmem:[#allocation2 + $0x5a] ss:$0 sm:$0xff] }
  0xf0   : > { %v920_v53 = vadd.f32 %v919_v17, %v903_v39  ;;  %v503_v58 = vmul.f32 %v1368_v48, %v1646_v31  ;;  %v486_v11 = vadd.f32 %v485_v47, %v468_v3  ;;  %v613_v13 = vmul.f32 %v1374_v29, %v1658_v43  ;;  %v1381_v48 = vld [vmem:[#allocation2 + $0x58] ss:$0 sm:$0xff]  ;;  %v1382_v47 = vld [vmem:[#allocation2 + $0x59] ss:$0 sm:$0xff] }
  0xf1   : > { %v712_v24 = vadd.f32 %v711_v6, %v695_v1  ;;  %v818_v38 = vadd.f32 %v817_v26, %v801_v32  ;;  %v1373_v6 = vld [vmem:[#allocation2 + $0x38] ss:$0 sm:$0xff]  ;;  %v1375_v32 = vld [vmem:[#allocation2 + $0x3a] ss:$0 sm:$0xff]  ;;  %v1376_v26 = vld [vmem:[#allocation2 + $0x3b] ss:$0 sm:$0xff]  ;;  %v987_v39 = vmul.f32 %v1364_v2, %v1775_v62  ;;  %v557_v43 = vmul.f32 %v1371_v12, %v1678_v0 }
  0xf2   : > { %v937_v1 = vadd.f32 %v936_v55, %v920_v53  ;;  %v597_v19 = vmul.f32 %v1373_v6, %v1650_v37  ;;  %v504_v31 = vadd.f32 %v503_v58, %v486_v11  ;;  %v630_v41 = vmul.f32 %v1375_v32, %v1661_v45  ;;  %v1379_v45 = vld [vmem:[#allocation2 + $0x3e] ss:$0 sm:$0xff]  ;;  %v1384_v58 = vld [vmem:[#allocation2 + $0x5b] ss:$0 sm:$0xff] }
  0xf3   : > { %1164 = vst.msk [vmem:[%s1716_s21 + $0x30] sm:$0xf] %vm577_vm3, %v712_v24  ;;  %v835_v57 = vadd.f32 %v834_v35, %v818_v38  ;;  %v970_v24 = vmul.f32 %v1363_v46, %v1768_v44  ;;  %v1372_v38 = vld [vmem:[#allocation2 + $0x1f] ss:$0 sm:$0xff]  ;;  %v647_v37 = vmul.f32 %v1376_v26, %v1665_v50  ;;  %v664_v46 = vmul.f32 %v1377_v7, %v1675_v63 }
  0xf4   : > { %v954_v10 = vadd.f32 %v953_v27, %v937_v1  ;;  %v522_v17 = vadd.f32 %v521_v20, %v504_v31  ;;  %v614_v35 = vadd.f32 %v613_v13, %v597_v19  ;;  %v737_v51 = vmul.f32 %v1381_v48, %v1703_v23  ;;  %v1380_v1 = vld [vmem:[#allocation2 + $0x3f] ss:$0 sm:$0xff]  ;;  %v1386_v20 = vld [vmem:[#allocation2 + $0x5d] ss:$0 sm:$0xff] }
  0xf5   : > { %v852_v9 = vadd.f32 %v851_v61, %v835_v57  ;;  %v418_v57 = vpop.f32.mrf.mxu3  ;;  %v575_v50 = vmul.f32 %v1372_v38, %v1685_v8  ;;  %v753_v3 = vmul.f32 %v1382_v47, %v1708_v30  ;;  %v681_v0 = vmul.f32 %v1378_v40, %v1691_v15  ;;  %v1388_v26 = vld [vmem:[#allocation2 + $0x5f] ss:$0 sm:$0xff] }
  0xf6   : > { %v971_v33 = vadd.f32 %v970_v24, %v954_v10  ;;  %v540_v53 = vadd.f32 %v539_v21, %v522_v17  ;;  %v631_v55 = vadd.f32 %v630_v41, %v614_v35  ;;  %v770_v6 = vmul.f32 %v1383_v56, %v1712_v34  ;;  %437 = vst.msk [vmem:[#allocation2 + $0x78] sm:$0xff] %vm421_vm2, %v418_v57  ;;  %v1387_v10 = vld [vmem:[#allocation2 + $0x5e] ss:$0 sm:$0xff] }
  0xf7   : > { %1174 = vst.msk [vmem:[%s1716_s21 + $0x14] sm:$0xf] %vm577_vm3, %v852_v9  ;;  %v754_v28 = vadd.f32 %v753_v3, %v737_v51  ;;  %v1385_v9 = vld [vmem:[#allocation2 + $0x5c] ss:$0 sm:$0xff]  ;;  %v698_v8 = vmul.f32 %v1379_v45, %v1695_v18  ;;  %v787_v30 = vmul.f32 %v1384_v58, %v1722_v42  ;;  %v715_v12 = vmul.f32 %v1380_v1, %v1700_v22 }
  0xf8   : > { %v988_v36 = vadd.f32 %v987_v39, %v971_v33  ;;  %v558_v61 = vadd.f32 %v557_v43, %v540_v53  ;;  %v648_v2 = vadd.f32 %v647_v37, %v631_v55  ;;  %v804_v34 = vmul.f32 %v1385_v9, %v1730_v52 }
  0xf9   : > { %v771_v11 = vadd.f32 %v770_v6, %v754_v28  ;;  %v821_v32 = vmul.f32 %v1386_v20, %v1740_v60  ;;  %v838_v42 = vmul.f32 %v1387_v10, %v1749_v5  ;;  %v855_v33 = vmul.f32 %v1388_v26, %v1758_v16 }
  0xfa   : > { %1185 = vst.msk [vmem:[%s1716_s21 + $0x34] sm:$0xf] %vm577_vm3, %v988_v36  ;;  %v576_v63 = vadd.f32 %v575_v50, %v558_v61  ;;  %v665_v27 = vadd.f32 %v664_v46, %v648_v2 }
  0xfb   : > { %v788_v29 = vadd.f32 %v787_v30, %v771_v11 }
  0xfc   : > { %1154 = vst.msk [vmem:[%s1716_s21 + $0x18] sm:$0xf] %vm577_vm3, %v576_v63  ;;  %v682_v23 = vadd.f32 %v681_v0, %v665_v27 }
  0xfd   : > { %v805_v19 = vadd.f32 %v804_v34, %v788_v29  ;;  %v1389_v31 = vld [vmem:[#allocation2 + $0x78] ss:$0 sm:$0xff]  ;;  %v1390_v13 = vld [vmem:[#allocation2 + $0x79] ss:$0 sm:$0xff]  ;;  %v1391_v7 = vld [vmem:[#allocation2 + $0x7a] ss:$0 sm:$0xff] }
  0xfe   : > { %v699_v15 = vadd.f32 %v698_v8, %v682_v23  ;;  %v873_v22 = vmul.f32 %v1389_v31, %v1727_v49  ;;  %v889_v39 = vmul.f32 %v1390_v13, %v1733_v54  ;;  %v1392_v60 = vld [vmem:[#allocation2 + $0x7b] ss:$0 sm:$0xff]  ;;  %v906_v21 = vmul.f32 %v1391_v7, %v1737_v59  ;;  %v1393_v38 = vld [vmem:[#allocation2 + $0x7c] ss:$0 sm:$0xff]  ;;  %v1394_v35 = vld [vmem:[#allocation2 + $0x7d] ss:$0 sm:$0xff] }
  0xff   : > { %v822_v18 = vadd.f32 %v821_v32, %v805_v19  ;;  %v923_v49 = vmul.f32 %v1392_v60, %v1746_v4  ;;  %v940_v16 = vmul.f32 %v1393_v38, %v1755_v14  ;;  %v1395_v54 = vld [vmem:[#allocation2 + $0x7e] ss:$0 sm:$0xff]  ;;  %v957_v36 = vmul.f32 %v1394_v35, %v1763_v25  ;;  %v1396_v48 = vld [vmem:[#allocation2 + $0x7f] ss:$0 sm:$0xff] }
 0x100   : > { %v716_v24 = vadd.f32 %v715_v12, %v699_v15  ;;  %v890_v17 = vadd.f32 %v889_v39, %v873_v22  ;;  %v974_v4 = vmul.f32 %v1395_v54, %v1768_v44  ;;  %v991_v43 = vmul.f32 %v1396_v48, %v1775_v62 }
 0x101   : > { %v839_v52 = vadd.f32 %v838_v42, %v822_v18 }
 0x102   : > { %1165 = vst.msk [vmem:[%s1716_s21 + $0x38] sm:$0xf] %vm577_vm3, %v716_v24  ;;  %v907_v5 = vadd.f32 %v906_v21, %v890_v17 }
 0x103   : > { %v856_v41 = vadd.f32 %v855_v33, %v839_v52 }
 0x104   : > { %v924_v37 = vadd.f32 %v923_v49, %v907_v5 }
 0x105   : > { %1175 = vst.msk [vmem:[%s1716_s21 + $0x1c] sm:$0xf] %vm577_vm3, %v856_v41 }
 0x106   : > { %v941_v40 = vadd.f32 %v940_v16, %v924_v37 }
 0x108   : > { %v958_v59 = vadd.f32 %v957_v36, %v941_v40 }
 0x10a   : > { %v975_v53 = vadd.f32 %v974_v4, %v958_v59 }
 0x10c   : > { %v992_v14 = vadd.f32 %v991_v43, %v975_v53 }
 0x10e   : > { %1186 = vst.msk [vmem:[%s1716_s21 + $0x3c] sm:$0xf] %vm577_vm3, %v992_v14 }
 0x10f   : > { %1424 = shalt.err (!%p1421_p11)
}
 0x110   : > { %s1493_s10 = smov 128   ;;  %s1494_s21 = smov 256  }
 0x111   : > { %s1495_s16 = smov 8  }
 0x112   : > { %1195 = dma.vmem_to_hbm [thread:$0]  (%p1576_p8), %s1012_s30, 1024, %s1014_s5, %s998_s6, %s1493_s10, %s1494_s21, %s1495_s16  }
 0x113 PF: > { %p1201_p12 = scmp.ge.s32.totalorder %s1491_s19, 2  ;;  %s1028_s28 = sand.u32 1, %s1463_s12  }
 0x114   : > { %s1029_s29 = scalar_lea.sflag [#allocation5], %s1028_s28 }
 0x115   : > { %p1198_p13 = pnand %p1201_p12, %p1580_p9 }
 0x117   : > { %p1199_p0 = pneg %p1198_p13 }
 0x119   : > { %1458 = dma.done.wait (%p1199_p0), %s1029_s29, 1024  }
 0x11a   : > { %1460 = vsyncadd (%p1199_p0), %s1029_s29, 4294966272  ;;  %s16_s19 = sadd.s32 1, %s1491_s19   ;;  %s1962_s12 = smov %s1467_s13 }
 0x11b   : > { %p13_p1 = scmp.ge.s32.totalorder %s16_s19, 6   ;;  %s1963_s13 = smov %s1471_s14 }
 0x11c   : > { %s1964_s14 = smov %s1588_s4  ;;  %s1965_s15 = smov %s1483_s17 }
 0x11d   : > { %s1966_s16 = smov %s1487_s18  ;;  %s1967_s17 = smov %s1970_s22 }
 0x11e   : > { %s1968_s18 = smov %s1974_s23  ;;  %15 = sbr.rel (!%p13_p1) target bundleno = 5 (0x5), region = 127 }
 0x123   :  { %1035 = vsyncpa [#allocation5], 1 }
 0x124   :  { %1037 = vsyncpa [#allocation5 + $0x1], 1 }

</bundles_post_ra>
